<compile_context>
chip_gen: v7x
topology: tpu7x:2x2x1
jax: 0.10.0
libtpu: 0.0.40
codegen_flags: <defaults>
</compile_context>

<pallas_src>
import numpy as np
import jax
import jax.numpy as jnp
from jax import lax
from jax.experimental import pallas as pl
from jax.experimental.pallas import tpu as pltpu

RADIUS = 0.005      # _compute_labels: radius
BIG = 100000.0      # masking constant used by the reference implementation


# ----------------------------------------------------------------------------
# synthetic, deterministic gripper control points (stand-in for
# utils.get_dc6d_control_point_tensor — no file loading in this script)
# ----------------------------------------------------------------------------
def get_dc6d_control_point_tensor(symmetric=False):
    cps = np.array([[0.0,   0.0, 0.0],
                    [0.053, 0.0, 0.075],
                    [-0.053, 0.0, 0.075],
                    [0.053, 0.0, 0.105],
                    [-0.053, 0.0, 0.105]], dtype=np.float32)
    if symmetric:
        cps = cps[[0, 2, 1, 4, 3]]
    return cps  # (K, 3)


def _build_rot_to_cp_matrix(cp):
    # flat_cp[n, 3k+i] = sum_j R[n, i, j] * cp[k, j]   ->   rot9 @ A
    K = cp.shape[0]
    A = np.zeros((9, 3 * K), np.float32)
    for k in range(K):
        for i in range(3):
            for j in range(3):
                A[3 * i + j, 3 * k + i] = cp[k, j]
    return A


def _build_trans_to_cp_matrix(K):
    # flat_cp[n, 3k+i] += t[n, i]   ->   trans @ Bt
    Bm = np.zeros((3, 3 * K), np.float32)
    for k in range(K):
        for i in range(3):
            Bm[i, 3 * k + i] = 1.0
    return Bm


def _pad_batch(x, b_pad):
    B = x.shape[0]
    if b_pad == B:
        return x
    pad = jnp.zeros((b_pad - B,) + x.shape[1:], x.dtype)
    return jnp.concatenate([x, pad], axis=0)


# ----------------------------------------------------------------------------
# Pallas kernel: all heavy compute for Bb batch elements per grid step.
# All per-point tensors are lane-dense (last dim = N or Mp); every matmul is
# the standard  lhs(b, i, k) @ rhs(b, k, j)  orientation.
# ----------------------------------------------------------------------------
def _cgn_loss_kernel(
    pred_ref,      # (Bb, 4+NB, N)  rows: [x, y, z, score, width logits (NB)]
    pred_cpT_ref,  # (Bb, N, K3)    predicted-grasp control points (flat)
    cnn_ref,       # (Bb, Mp, 3)    contact xyz (contacts on sublanes)
    cfeat_ref,     # (Bb, 1+2K3, Mp) rows: [width, gt cp (K3), sym gt cp (K3)]
    bins_ref,      # (NB, 3)        columns: [lo, hi, bin_weight]
    out_ref,       # (Bb, 1, 3)     [bin_ce, width, adds]
):
    f32 = jnp.float32
    pred = pred_ref[...]
    Bb, _, N = pred.shape
    nb = bins_ref.shape[0]
    Mp = cnn_ref.shape[1]
    K3 = pred_cpT_ref.shape[2]

    p_xyz = pred[:, 0:3, :]               # (Bb, 3, N)
    s_pred = pred[:, 3:4, :]              # (Bb, 1, N)
    logits = pred[:, 4:4 + nb, :]         # (Bb, NB, N)

    ones_row = jnp.ones((Bb, 1, N), f32)

    # ---------- _compute_labels: nearest gt contact per predicted point ----------
    c_nn = cnn_ref[...]                                        # (Bb, Mp, 3)
    c_sq = jnp.sum(c_nn * c_nn, axis=2, keepdims=True)         # (Bb, Mp, 1)
    c_aug = jnp.concatenate([c_nn, c_sq], axis=2)              # (Bb, Mp, 4)
    p_aug = jnp.concatenate([-2.0 * p_xyz, ones_row], axis=1)  # (Bb, 4, N)
    # d2_core[b, m, n] = |c_m|^2 - 2 <c_m, p_n>   (add |p_n|^2 afterwards)
    d2_core = jnp.einsum('bmf,bfn->bmn', c_aug, p_aug,
                         preferred_element_type=f32)           # (Bb, Mp, N)
    p_sq = jnp.sum(p_xyz * p_xyz, axis=1, keepdims=True)       # (Bb, 1, N)

    min_core = jnp.min(d2_core, axis=1, keepdims=True)         # (Bb, 1, N)
    min_d2 = min_core + p_sq
    y = (min_d2 < RADIUS * RADIUS).astype(f32)                 # (Bb, 1, N)

    row = lax.broadcasted_iota(jnp.int32, (Bb, Mp, N), 1)
    sel = jnp.min(jnp.where(d2_core <= min_core, row, Mp),
                  axis=1, keepdims=True)                       # (Bb, 1, N)
    one_hot = (row == sel).astype(f32)                         # (Bb, Mp, N)

    # ---------- fused gather: width + gt/sym control points ----------
    gathered = jnp.einsum('bfm,bmn->bfn', cfeat_ref[...], one_hot,
                          preferred_element_type=f32)          # (Bb, 1+2K3, N)
    w_label = gathered[:, 0:1, :]                              # (Bb, 1, N)
    g_cp1 = gathered[:, 1:1 + K3, :]                           # (Bb, K3, N)
    g_cp2 = gathered[:, 1 + K3:1 + 2 * K3, :]                  # (Bb, K3, N)

    n_pos = jnp.sum(y, axis=2, keepdims=True)                  # (Bb, 1, 1)
    pos_in_view = jnp.maximum(n_pos, 1.0)                      # clamp(min=1)

    # ---------- bin (success) cross-entropy with balanced sampling ----------
    log_s = jnp.maximum(jnp.log(s_pred), -100.0)      # matches torch BCE log clamp
    log_1ms = jnp.maximum(jnp.log(1.0 - s_pred), -100.0)
    bce = -(y * log_s + (1.0 - y) * log_1ms)                   # (Bb, 1, N)

    # TODO(synk): torch.randperm-based stochastic negative sampling replaced by a
    # deterministic "first K negatives" selection (K = clamp(#pos, min=1)).
    neg = 1.0 - y
    ridx = lax.broadcasted_iota(jnp.int32, (Bb, N, N), 1)
    cidx = lax.broadcasted_iota(jnp.int32, (Bb, N, N), 2)
    tri = (ridx <= cidx).astype(f32)                           # (Bb, N, N)
    cum_neg = jnp.einsum('bkm,bmn->bkn', neg, tri,
                         preferred_element_type=f32)           # (Bb, 1, N)
    sel_neg = neg * (cum_neg <= pos_in_view).astype(f32)
    n_neg_sel = jnp.sum(sel_neg, axis=2, keepdims=True)        # (Bb, 1, 1)
    sum_pos = jnp.sum(bce * y, axis=2, keepdims=True)
    sum_neg = jnp.sum(bce * sel_neg, axis=2, keepdims=True)
    bin_ce = jnp.where(
        n_pos > 0.0,
        (sum_pos + sum_neg) / jnp.maximum(n_pos + n_neg_sel, 1.0),
        sum_neg / jnp.maximum(n_neg_sel, 1.0))                 # (Bb, 1, 1)

    # ---------- grasp width (multi-hot bin) loss — lane-dense (NB, N) ----------
    binsc = bins_ref[...]                                      # (NB, 3)
    lo = binsc[:, 0:1]
    hi = binsc[:, 1:2]
    bw = binsc[:, 2:3]
    multihot = jnp.logical_and(w_label >= lo, w_label < hi).astype(f32)  # (Bb,NB,N)
    # BCE-with-logits, numerically-stable form (same as torch)
    bcel = (jnp.maximum(logits, 0.0) - logits * multihot
            + jnp.log(1.0 + jnp.exp(-jnp.abs(logits))))
    wl = jnp.mean(bw * bcel, axis=1, keepdims=True)            # (Bb, 1, N)
    width_l = jnp.sum(wl * y, axis=2, keepdims=True) / pos_in_view   # (Bb, 1, 1)

    # ---------- ADD-S loss ----------
    # Masked (non-positive) candidates get huge control points so they never
    # win the min when any positive candidate exists (same effect as the
    # reference's 1e5 rot/trans masking).
    gt1 = jnp.where(y > 0.0, g_cp1, BIG)                       # (Bb, K3, N)
    gt2 = jnp.where(y > 0.0, g_cp2, BIG)
    gsq1 = jnp.sum(gt1 * gt1, axis=1, keepdims=True)           # (Bb, 1, N)
    gsq2 = jnp.sum(gt2 * gt2, axis=1, keepdims=True)

    pcp = pred_cpT_ref[...]                                    # (Bb, N, K3)
    psq_cp = jnp.sum(pcp * pcp, axis=2, keepdims=True)         # (Bb, N, 1)
    pm2 = -2.0 * pcp
    t1 = jnp.einsum('bnf,bfm->bnm', pm2, gt1,
                    preferred_element_type=f32) + gsq1         # (Bb, N, N)
    t2 = jnp.einsum('bnf,bfm->bnm', pm2, gt2,
                    preferred_element_type=f32) + gsq2
    tmin = jnp.min(jnp.minimum(t1, t2), axis=2, keepdims=True)  # (Bb, N, 1)
    min_sq = tmin + psq_cp
    sqrt_d = jnp.sqrt(jnp.maximum(min_sq, 0.0))                # (Bb, N, 1)
    sy = s_pred * y                                            # (Bb, 1, N)
    adds_num = jnp.einsum('bkn,bnj->bkj', sy, sqrt_d,
                          preferred_element_type=f32)          # (Bb, 1, 1)
    adds_l = adds_num / pos_in_view

    out_ref[...] = jnp.concatenate([bin_ce, width_l, adds_l], axis=2)


# ----------------------------------------------------------------------------
# wrapper module
# ----------------------------------------------------------------------------
class ContactGraspNetLoss:
    def __init__(self, config):
        cfg = config['MODEL']
        self.offset_bins = np.asarray(cfg['offset_bins'], np.float32)
        self.bin_weights = np.asarray(cfg['bin_weights'], np.float32)
        self.gripper_width = float(cfg['gripper_width'])

        # _get_bin_vals (kept for fidelity; unused by forward)
        bv = (self.offset_bins[1:] + self.offset_bins[:-1]) / 2.0
        bv[-1] = self.offset_bins[-1]
        self.bin_vals = np.minimum(bv, self.gripper_width - 0.005)

        cp = get_dc6d_control_point_tensor(symmetric=False)     # (K, 3)
        cp_sym = get_dc6d_control_point_tensor(symmetric=True)  # (K, 3)
        A_cp = _build_rot_to_cp_matrix(cp)                       # (9, 3K)
        A_sym = _build_rot_to_cp_matrix(cp_sym)                  # (9, 3K)
        B_t = _build_trans_to_cp_matrix(cp.shape[0])             # (3, 3K)
        # fused [rot|trans] -> flat control points
        self.R_cp = np.concatenate([A_cp, B_t], axis=0)          # (12, 3K)
        self.R_sym = np.concatenate([A_sym, B_t], axis=0)        # (12, 3K)

        # single shared constant: [lower bound | upper bound | bin weight]
        self.bin_consts = np.stack(
            [self.offset_bins[:-1], self.offset_bins[1:], self.bin_weights],
            axis=1).astype(np.float32)                           # (NB, 3)

    @staticmethod
    def _batch_blocking(B, cap=8):
        """Batch block size Bb and padded batch (>=2 grid steps for v7x's 2 TCs)."""
        if B <= 1:
            return 1, 1
        steps = max(2, -(-B // cap))
        bb = -(-B // steps)
        return bb, steps * bb

    def __call__(self, pred, data, epoch=0, is_train=True):
        f32 = jnp.float32
        pred_grasps = jnp.asarray(pred['pred_grasps'], f32)        # (B, N, 4, 4)
        pred_scores = jnp.asarray(pred['pred_scores'], f32)        # (B, N, 1)
        pred_points = jnp.asarray(pred['pred_points'], f32)        # (B, N, 3)
        width_head = jnp.asarray(pred['grasp_width_head'], f32)    # (B, NB, N) native

        contact_pts = jnp.asarray(data['pos_contact_points'], f32)  # (B, M, 3)
        B, N, _ = pred_points.shape
        M = contact_pts.shape[1]
        NB = self.bin_consts.shape[0]
        K3 = self.R_cp.shape[1]

        contact_w = jnp.asarray(data['pos_contact_width'], f32).reshape(B, M, 1)
        contact_rot = jnp.asarray(data['pos_contact_rot'], f32).reshape(B, M, 9)
        contact_trans = jnp.asarray(data['pos_contact_trans'], f32)   # (B, M, 3)
        contact_rt = jnp.concatenate([contact_rot, contact_trans], axis=2)  # (B,M,12)

        pred_rot = pred_grasps[:, :, :3, :3].reshape(B, N, 9)
        pred_trans = pred_grasps[:, :, :3, 3]
        pred_rt = jnp.concatenate([pred_rot, pred_trans], axis=2)     # (B, N, 12)

        # Control-point transforms (tiny matmuls) applied here so the kernel only
        # ever sees standard-orientation, lane-dense operands (layout plumbing).
        R_cp = jnp.asarray(self.R_cp)
        R_sym = jnp.asarray(self.R_sym)
        pred_cpT = jnp.einsum('bnr,rk->bnk', pred_rt, R_cp)           # (B, N, K3)
        c_cp1 = jnp.einsum('bmr,rk->bmk', contact_rt, R_cp)           # (B, M, K3)
        c_cp2 = jnp.einsum('bmr,rk->bmk', contact_rt, R_sym)          # (B, M, K3)

        # lane-dense pred bundle: rows = [xyz(3), score(1), width logits(NB)]
        pred_rows = jnp.concatenate([pred_points, pred_scores], axis=2)     # (B,N,4)
        pred_bundle = jnp.concatenate(
            [jnp.transpose(pred_rows, (0, 2, 1)), width_head], axis=1)      # (B,4+NB,N)

        # contacts padded to sublane-aligned count with far-away sentinels
        Mp = max(8, -(-M // 8) * 8)
        cfeat_rows = jnp.concatenate([contact_w, c_cp1, c_cp2], axis=2)     # (B,M,1+2K3)
        if Mp != M:
            pad_xyz = jnp.full((B, Mp - M, 3), 1e3, f32)   # never wins nearest-neighbour
            cnn = jnp.concatenate([contact_pts, pad_xyz], axis=1)
            pad_feat = jnp.zeros((B, Mp - M, 1 + 2 * K3), f32)
            cfeat_rows = jnp.concatenate([cfeat_rows, pad_feat], axis=1)
        else:
            cnn = contact_pts
        contact_feat = jnp.transpose(cfeat_rows, (0, 2, 1))                 # (B,1+2K3,Mp)

        # batch blocking + padding (padded rows sliced off before the means)
        Bb, B_pad = self._batch_blocking(B)
        pred_bundle = _pad_batch(pred_bundle, B_pad)
        pred_cpT = _pad_batch(pred_cpT, B_pad)
        cnn = _pad_batch(cnn, B_pad)
        contact_feat = _pad_batch(contact_feat, B_pad)

        FP = 4 + NB
        FC = 1 + 2 * K3
        grid = (B_pad // Bb,)
        in_specs = [
            pl.BlockSpec((Bb, FP, N), lambda b: (b, 0, 0)),     # pred bundle
            pl.BlockSpec((Bb, N, K3), lambda b: (b, 0, 0)),     # pred control points
            pl.BlockSpec((Bb, Mp, 3), lambda b: (b, 0, 0)),     # contact xyz
            pl.BlockSpec((Bb, FC, Mp), lambda b: (b, 0, 0)),    # contact features
            pl.BlockSpec((NB, 3), lambda b: (0, 0)),            # shared bin constants
        ]
        out_specs = pl.BlockSpec((Bb, 1, 3), lambda b: (b, 0, 0))
        out_shape = jax.ShapeDtypeStruct((B_pad, 1, 3), f32)

        losses = pl.pallas_call(
            _cgn_loss_kernel,
            grid=grid,
            in_specs=in_specs,
            out_specs=out_specs,
            out_shape=out_shape,
            compiler_params=pltpu.CompilerParams(
                dimension_semantics=("parallel",)),
        )(pred_bundle, pred_cpT, cnn, contact_feat,
          jnp.asarray(self.bin_consts))

        valid = losses[:B, 0, :]
        bin_ce_loss = jnp.mean(valid[:, 0])
        width_loss = jnp.mean(valid[:, 1])
        adds_loss = jnp.mean(valid[:, 2])
        total_loss = 1.0 * bin_ce_loss + 1.0 * width_loss + 3.0 * adds_loss
        return total_loss, bin_ce_loss, width_loss, adds_loss


# ----------------------------------------------------------------------------
if __name__ == "__main__":
    config = {'MODEL': {
        'bin_weights': [0.16652107, 0.21488856, 0.37031708, 0.55618503, 0.75124664,
                        0.93943357, 1.07824539, 1.19423112, 1.55731375, 3.17161779],
        'offset_bins': [0.0, 0.00794435329, 0.0158887021, 0.0238330509, 0.0317773996,
                        0.0397217484, 0.0476660972, 0.055610446, 0.0635547948,
                        0.0714991435, 0.08],
        'gripper_width': 0.08,
    }}
    loss_fn = ContactGraspNetLoss(config)

    B, N, M, NB = 2, 128, 64, 10
    key = jax.random.PRNGKey(0)
    ks = jax.random.split(key, 8)
    pred_points = jax.random.uniform(ks[0], (B, N, 3), jnp.float32, 0.0, 0.02)
    pred_scores = jax.nn.sigmoid(jax.random.normal(ks[1], (B, N, 1), jnp.float32))
    pred_grasps = jax.random.normal(ks[2], (B, N, 4, 4), jnp.float32) * 0.1
    grasp_width_head = jax.random.normal(ks[3], (B, NB, N), jnp.float32)
    pos_contact_points = jax.random.uniform(ks[4], (B, M, 3), jnp.float32, 0.0, 0.02)
    pos_contact_width = jax.random.uniform(ks[5], (B, M), jnp.float32, 0.0, 0.08)
    pos_contact_rot = jax.random.normal(ks[6], (B, M, 3, 3), jnp.float32)
    pos_contact_trans = jax.random.normal(ks[7], (B, M, 3), jnp.float32) * 0.05

    pred = {'pred_grasps': pred_grasps, 'pred_scores': pred_scores,
            'pred_points': pred_points, 'grasp_width_head': grasp_width_head}
    data = {'pos_contact_points': pos_contact_points,
            'pos_contact_width': pos_contact_width,
            'pos_contact_rot': pos_contact_rot,
            'pos_contact_trans': pos_contact_trans}

    total, bce, width, adds = loss_fn(pred, data, epoch=0, is_train=True)
    jax.block_until_ready(total)
    print("KERNEL_OK")
</pallas_src>

<mosaic_0001>
module attributes {stable_mosaic.version = 11 : i64} {
  func.func @_cgn_loss_kernel(%arg0: i32, %arg1: memref<1x14x128xf32, #tpu.memory_space<vmem>>, %arg2: memref<1x128x15xf32, #tpu.memory_space<vmem>>, %arg3: memref<1x64x3xf32, #tpu.memory_space<vmem>>, %arg4: memref<1x31x64xf32, #tpu.memory_space<vmem>>, %arg5: memref<10x3xf32, #tpu.memory_space<vmem>>, %arg6: memref<1x1x3xf32, #tpu.memory_space<vmem>>) attributes {dimension_semantics = [#tpu.dimension_semantics<parallel>], iteration_bounds = array<i64: 2>, scalar_prefetch = 0 : i64, scratch_operands = 0 : i64, tpu.core_type = #tpu.core_type<tc>, window_params = [{transform_indices = @transform_0, window_bounds = array<i64: 1, 14, 128>}, {transform_indices = @transform_1, window_bounds = array<i64: 1, 128, 15>}, {transform_indices = @transform_2, window_bounds = array<i64: 1, 64, 3>}, {transform_indices = @transform_3, window_bounds = array<i64: 1, 31, 64>}, {pipeline_mode = #tpu.pipeline_mode<synchronous>, transform_indices = @transform_4, window_bounds = array<i64: 10, 3>}, {transform_indices = @transform_5, window_bounds = array<i64: 1, 1, 3>}]} {
    %c0 = arith.constant 0 : index
    %c0_0 = arith.constant 0 : index
    %c0_1 = arith.constant 0 : index
    %0 = vector.load %arg1[%c0, %c0_0, %c0_1] : memref<1x14x128xf32, #tpu.memory_space<vmem>>, vector<1x14x128xf32>
    %1 = vector.extract_strided_slice %0 {offsets = [0, 0, 0], sizes = [1, 3, 128], strides = [1, 1, 1]} : vector<1x14x128xf32> to vector<1x3x128xf32>
    %2 = vector.extract_strided_slice %0 {offsets = [0, 3, 0], sizes = [1, 1, 128], strides = [1, 1, 1]} : vector<1x14x128xf32> to vector<1x1x128xf32>
    %3 = vector.extract_strided_slice %0 {offsets = [0, 4, 0], sizes = [1, 10, 128], strides = [1, 1, 1]} : vector<1x14x128xf32> to vector<1x10x128xf32>
    %cst = arith.constant 1.000000e+00 : f32
    %4 = vector.broadcast %cst : f32 to vector<1x1x128xf32>
    %c0_2 = arith.constant 0 : index
    %c0_3 = arith.constant 0 : index
    %c0_4 = arith.constant 0 : index
    %5 = vector.load %arg3[%c0_2, %c0_3, %c0_4] : memref<1x64x3xf32, #tpu.memory_space<vmem>>, vector<1x64x3xf32>
    %6 = arith.mulf %5, %5 : vector<1x64x3xf32>
    %cst_5 = arith.constant dense<0.000000e+00> : vector<1x64xf32>
    %7 = vector.multi_reduction <add>, %6, %cst_5 [2] : vector<1x64x3xf32> to vector<1x64xf32>
    %8 = vector.shape_cast %7 : vector<1x64xf32> to vector<1x64x1xf32>
    %9 = tpu.concatenate %5, %8 in 2 : vector<1x64x3xf32>, vector<1x64x1xf32> -> vector<1x64x4xf32>
    %cst_6 = arith.constant -2.000000e+00 : f32
    %10 = vector.broadcast %cst_6 : f32 to vector<1x3x128xf32>
    %11 = arith.mulf %10, %1 : vector<1x3x128xf32>
    %12 = tpu.concatenate %11, %4 in 1 : vector<1x3x128xf32>, vector<1x1x128xf32> -> vector<1x4x128xf32>
    "tpu.trace_start"() <{level = 10 : i32, message = "bmf,bfn->bmn"}> : () -> ()
    %cst_7 = arith.constant dense<0.000000e+00> : vector<1x64x128xf32>
    %13 = tpu.matmul %9, %12, %cst_7 {dimension_numbers = #tpu.dot_dimension_numbers<[2], [1], [1], [2], [0, 0, 0, 1, 1, 2], [0], [0]>} : vector<1x64x4xf32>, vector<1x4x128xf32>, vector<1x64x128xf32> -> vector<1x64x128xf32>
    "tpu.trace_stop"() : () -> ()
    %14 = arith.mulf %1, %1 : vector<1x3x128xf32>
    %cst_8 = arith.constant dense<0.000000e+00> : vector<1x128xf32>
    %15 = vector.multi_reduction <add>, %14, %cst_8 [1] : vector<1x3x128xf32> to vector<1x128xf32>
    %16 = vector.shape_cast %15 : vector<1x128xf32> to vector<1x1x128xf32>
    %cst_9 = arith.constant dense<0x7F800000> : vector<1x128xf32>
    %17 = vector.multi_reduction <minimumf>, %13, %cst_9 [1] : vector<1x64x128xf32> to vector<1x128xf32>
    %18 = vector.shape_cast %17 : vector<1x128xf32> to vector<1x1x128xf32>
    %19 = arith.addf %18, %16 : vector<1x1x128xf32>
    %cst_10 = arith.constant 2.500000e-05 : f32
    %20 = vector.broadcast %cst_10 : f32 to vector<1x1x128xf32>
    %21 = arith.cmpf olt, %19, %20 : vector<1x1x128xf32>
    %22 = arith.extui %21 : vector<1x1x128xi1> to vector<1x1x128xi32>
    %23 = arith.sitofp %22 : vector<1x1x128xi32> to vector<1x1x128xf32>
    %24 = tpu.iota {dimensions = array<i32: 1>} : vector<1x64x128xi32>
    %25 = vector.broadcast %18 : vector<1x1x128xf32> to vector<1x64x128xf32>
    %26 = arith.cmpf ole, %13, %25 : vector<1x64x128xf32>
    %c64_i32 = arith.constant 64 : i32
    %27 = vector.broadcast %c64_i32 : i32 to vector<1x64x128xi32>
    %28 = arith.select %26, %24, %27 : vector<1x64x128xi1>, vector<1x64x128xi32>
    %cst_11 = arith.constant dense<2147483647> : vector<1x128xi32>
    %29 = vector.multi_reduction <minsi>, %28, %cst_11 [1] : vector<1x64x128xi32> to vector<1x128xi32>
    %30 = vector.shape_cast %29 : vector<1x128xi32> to vector<1x1x128xi32>
    %31 = vector.broadcast %30 : vector<1x1x128xi32> to vector<1x64x128xi32>
    %32 = arith.cmpi eq, %24, %31 : vector<1x64x128xi32>
    %33 = arith.extui %32 : vector<1x64x128xi1> to vector<1x64x128xi32>
    %34 = arith.sitofp %33 : vector<1x64x128xi32> to vector<1x64x128xf32>
    %c0_12 = arith.constant 0 : index
    %c0_13 = arith.constant 0 : index
    %c0_14 = arith.constant 0 : index
    %35 = vector.load %arg4[%c0_12, %c0_13, %c0_14] : memref<1x31x64xf32, #tpu.memory_space<vmem>>, vector<1x31x64xf32>
    "tpu.trace_start"() <{level = 10 : i32, message = "bfm,bmn->bfn"}> : () -> ()
    %cst_15 = arith.constant dense<0.000000e+00> : vector<1x31x128xf32>
    %36 = tpu.matmul %35, %34, %cst_15 {dimension_numbers = #tpu.dot_dimension_numbers<[2], [1], [1], [2], [0, 0, 0, 1, 1, 2], [0], [0]>} : vector<1x31x64xf32>, vector<1x64x128xf32>, vector<1x31x128xf32> -> vector<1x31x128xf32>
    "tpu.trace_stop"() : () -> ()
    %37 = vector.extract_strided_slice %36 {offsets = [0, 0, 0], sizes = [1, 1, 128], strides = [1, 1, 1]} : vector<1x31x128xf32> to vector<1x1x128xf32>
    %38 = vector.extract_strided_slice %36 {offsets = [0, 1, 0], sizes = [1, 15, 128], strides = [1, 1, 1]} : vector<1x31x128xf32> to vector<1x15x128xf32>
    %39 = vector.extract_strided_slice %36 {offsets = [0, 16, 0], sizes = [1, 15, 128], strides = [1, 1, 1]} : vector<1x31x128xf32> to vector<1x15x128xf32>
    %cst_16 = arith.constant dense<0.000000e+00> : vector<1x1xf32>
    %40 = vector.multi_reduction <add>, %23, %cst_16 [2] : vector<1x1x128xf32> to vector<1x1xf32>
    %41 = vector.shape_cast %40 : vector<1x1xf32> to vector<1x1x1xf32>
    %cst_17 = arith.constant 1.000000e+00 : f32
    %42 = vector.broadcast %cst_17 : f32 to vector<1x1x1xf32>
    %43 = arith.maximumf %41, %42 : vector<1x1x1xf32>
    %44 = math.log %2 : vector<1x1x128xf32>
    %cst_18 = arith.constant -1.000000e+02 : f32
    %45 = vector.broadcast %cst_18 : f32 to vector<1x1x128xf32>
    %46 = arith.maximumf %44, %45 : vector<1x1x128xf32>
    %cst_19 = arith.constant 1.000000e+00 : f32
    %47 = vector.broadcast %cst_19 : f32 to vector<1x1x128xf32>
    %48 = arith.subf %47, %2 : vector<1x1x128xf32>
    %49 = math.log %48 : vector<1x1x128xf32>
    %cst_20 = arith.constant -1.000000e+02 : f32
    %50 = vector.broadcast %cst_20 : f32 to vector<1x1x128xf32>
    %51 = arith.maximumf %49, %50 : vector<1x1x128xf32>
    %52 = arith.mulf %23, %46 : vector<1x1x128xf32>
    %cst_21 = arith.constant 1.000000e+00 : f32
    %53 = vector.broadcast %cst_21 : f32 to vector<1x1x128xf32>
    %54 = arith.subf %53, %23 : vector<1x1x128xf32>
    %55 = arith.mulf %54, %51 : vector<1x1x128xf32>
    %56 = arith.addf %52, %55 : vector<1x1x128xf32>
    %cst_22 = arith.constant 0.000000e+00 : f32
    %57 = vector.broadcast %cst_22 : f32 to vector<1x1x128xf32>
    %58 = arith.subf %57, %56 : vector<1x1x128xf32>
    %cst_23 = arith.constant 1.000000e+00 : f32
    %59 = vector.broadcast %cst_23 : f32 to vector<1x1x128xf32>
    %60 = arith.subf %59, %23 : vector<1x1x128xf32>
    %61 = tpu.iota {dimensions = array<i32: 1>} : vector<1x128x128xi32>
    %62 = tpu.iota {dimensions = array<i32: 2>} : vector<1x128x128xi32>
    %63 = arith.cmpi sle, %61, %62 : vector<1x128x128xi32>
    %64 = arith.extui %63 : vector<1x128x128xi1> to vector<1x128x128xi32>
    %65 = arith.sitofp %64 : vector<1x128x128xi32> to vector<1x128x128xf32>
    "tpu.trace_start"() <{level = 10 : i32, message = "bkm,bmn->bkn"}> : () -> ()
    %cst_24 = arith.constant dense<0.000000e+00> : vector<1x1x128xf32>
    %66 = tpu.matmul %60, %65, %cst_24 {dimension_numbers = #tpu.dot_dimension_numbers<[2], [1], [1], [2], [0, 0, 0, 1, 1, 2], [0], [0]>} : vector<1x1x128xf32>, vector<1x128x128xf32>, vector<1x1x128xf32> -> vector<1x1x128xf32>
    "tpu.trace_stop"() : () -> ()
    %67 = vector.broadcast %43 : vector<1x1x1xf32> to vector<1x1x128xf32>
    %68 = arith.cmpf ole, %66, %67 : vector<1x1x128xf32>
    %69 = arith.extui %68 : vector<1x1x128xi1> to vector<1x1x128xi32>
    %70 = arith.sitofp %69 : vector<1x1x128xi32> to vector<1x1x128xf32>
    %71 = arith.mulf %60, %70 : vector<1x1x128xf32>
    %cst_25 = arith.constant dense<0.000000e+00> : vector<1x1xf32>
    %72 = vector.multi_reduction <add>, %71, %cst_25 [2] : vector<1x1x128xf32> to vector<1x1xf32>
    %73 = vector.shape_cast %72 : vector<1x1xf32> to vector<1x1x1xf32>
    %74 = arith.mulf %58, %23 : vector<1x1x128xf32>
    %cst_26 = arith.constant dense<0.000000e+00> : vector<1x1xf32>
    %75 = vector.multi_reduction <add>, %74, %cst_26 [2] : vector<1x1x128xf32> to vector<1x1xf32>
    %76 = vector.shape_cast %75 : vector<1x1xf32> to vector<1x1x1xf32>
    %77 = arith.mulf %58, %71 : vector<1x1x128xf32>
    %cst_27 = arith.constant dense<0.000000e+00> : vector<1x1xf32>
    %78 = vector.multi_reduction <add>, %77, %cst_27 [2] : vector<1x1x128xf32> to vector<1x1xf32>
    %79 = vector.shape_cast %78 : vector<1x1xf32> to vector<1x1x1xf32>
    %cst_28 = arith.constant 0.000000e+00 : f32
    %80 = vector.broadcast %cst_28 : f32 to vector<1x1x1xf32>
    %81 = arith.cmpf ogt, %41, %80 : vector<1x1x1xf32>
    %82 = arith.addf %76, %79 : vector<1x1x1xf32>
    %83 = arith.addf %41, %73 : vector<1x1x1xf32>
    %cst_29 = arith.constant 1.000000e+00 : f32
    %84 = vector.broadcast %cst_29 : f32 to vector<1x1x1xf32>
    %85 = arith.maximumf %83, %84 : vector<1x1x1xf32>
    %86 = arith.divf %82, %85 : vector<1x1x1xf32>
    %cst_30 = arith.constant 1.000000e+00 : f32
    %87 = vector.broadcast %cst_30 : f32 to vector<1x1x1xf32>
    %88 = arith.maximumf %73, %87 : vector<1x1x1xf32>
    %89 = arith.divf %79, %88 : vector<1x1x1xf32>
    %90 = arith.select %81, %86, %89 : vector<1x1x1xi1>, vector<1x1x1xf32>
    %c0_31 = arith.constant 0 : index
    %c0_32 = arith.constant 0 : index
    %91 = vector.load %arg5[%c0_31, %c0_32] : memref<10x3xf32, #tpu.memory_space<vmem>>, vector<10x3xf32>
    %92 = vector.extract_strided_slice %91 {offsets = [0, 0], sizes = [10, 1], strides = [1, 1]} : vector<10x3xf32> to vector<10x1xf32>
    %93 = vector.extract_strided_slice %91 {offsets = [0, 1], sizes = [10, 1], strides = [1, 1]} : vector<10x3xf32> to vector<10x1xf32>
    %94 = vector.extract_strided_slice %91 {offsets = [0, 2], sizes = [10, 1], strides = [1, 1]} : vector<10x3xf32> to vector<10x1xf32>
    %95 = vector.shape_cast %92 : vector<10x1xf32> to vector<1x10x1xf32>
    %96 = vector.broadcast %37 : vector<1x1x128xf32> to vector<1x10x128xf32>
    %97 = vector.broadcast %95 : vector<1x10x1xf32> to vector<1x10x128xf32>
    %98 = arith.cmpf oge, %96, %97 : vector<1x10x128xf32>
    %99 = vector.shape_cast %93 : vector<10x1xf32> to vector<1x10x1xf32>
    %100 = vector.broadcast %37 : vector<1x1x128xf32> to vector<1x10x128xf32>
    %101 = vector.broadcast %99 : vector<1x10x1xf32> to vector<1x10x128xf32>
    %102 = arith.cmpf olt, %100, %101 : vector<1x10x128xf32>
    %103 = arith.andi %98, %102 : vector<1x10x128xi1>
    %104 = arith.extui %103 : vector<1x10x128xi1> to vector<1x10x128xi32>
    %105 = arith.sitofp %104 : vector<1x10x128xi32> to vector<1x10x128xf32>
    %cst_33 = arith.constant 0.000000e+00 : f32
    %106 = vector.broadcast %cst_33 : f32 to vector<1x10x128xf32>
    %107 = arith.maximumf %3, %106 : vector<1x10x128xf32>
    %108 = arith.mulf %3, %105 : vector<1x10x128xf32>
    %109 = arith.subf %107, %108 : vector<1x10x128xf32>
    %110 = math.absf %3 : vector<1x10x128xf32>
    %cst_34 = arith.constant 0.000000e+00 : f32
    %111 = vector.broadcast %cst_34 : f32 to vector<1x10x128xf32>
    %112 = arith.subf %111, %110 : vector<1x10x128xf32>
    %113 = math.exp %112 : vector<1x10x128xf32>
    %cst_35 = arith.constant 1.000000e+00 : f32
    %114 = vector.broadcast %cst_35 : f32 to vector<1x10x128xf32>
    %115 = arith.addf %114, %113 : vector<1x10x128xf32>
    %116 = math.log %115 : vector<1x10x128xf32>
    %117 = arith.addf %109, %116 : vector<1x10x128xf32>
    %118 = vector.shape_cast %94 : vector<10x1xf32> to vector<1x10x1xf32>
    %119 = vector.broadcast %118 : vector<1x10x1xf32> to vector<1x10x128xf32>
    %120 = arith.mulf %119, %117 : vector<1x10x128xf32>
    %cst_36 = arith.constant dense<0.000000e+00> : vector<1x128xf32>
    %121 = vector.multi_reduction <add>, %120, %cst_36 [1] : vector<1x10x128xf32> to vector<1x128xf32>
    %122 = vector.shape_cast %121 : vector<1x128xf32> to vector<1x1x128xf32>
    %cst_37 = arith.constant 1.000000e+01 : f32
    %123 = vector.broadcast %cst_37 : f32 to vector<1x1x128xf32>
    %124 = arith.divf %122, %123 : vector<1x1x128xf32>
    %125 = arith.mulf %124, %23 : vector<1x1x128xf32>
    %cst_38 = arith.constant dense<0.000000e+00> : vector<1x1xf32>
    %126 = vector.multi_reduction <add>, %125, %cst_38 [2] : vector<1x1x128xf32> to vector<1x1xf32>
    %127 = vector.shape_cast %126 : vector<1x1xf32> to vector<1x1x1xf32>
    %128 = arith.divf %127, %43 : vector<1x1x1xf32>
    %cst_39 = arith.constant 0.000000e+00 : f32
    %129 = vector.broadcast %cst_39 : f32 to vector<1x1x128xf32>
    %130 = arith.cmpf ogt, %23, %129 : vector<1x1x128xf32>
    %cst_40 = arith.constant 1.000000e+05 : f32
    %131 = vector.shape_cast %130 : vector<1x1x128xi1> to vector<1x1x128xi1>
    %132 = vector.broadcast %131 : vector<1x1x128xi1> to vector<1x15x128xi1>
    %133 = vector.broadcast %cst_40 : f32 to vector<1x15x128xf32>
    %134 = arith.select %132, %38, %133 : vector<1x15x128xi1>, vector<1x15x128xf32>
    %cst_41 = arith.constant 0.000000e+00 : f32
    %135 = vector.broadcast %cst_41 : f32 to vector<1x1x128xf32>
    %136 = arith.cmpf ogt, %23, %135 : vector<1x1x128xf32>
    %cst_42 = arith.constant 1.000000e+05 : f32
    %137 = vector.shape_cast %136 : vector<1x1x128xi1> to vector<1x1x128xi1>
    %138 = vector.broadcast %137 : vector<1x1x128xi1> to vector<1x15x128xi1>
    %139 = vector.broadcast %cst_42 : f32 to vector<1x15x128xf32>
    %140 = arith.select %138, %39, %139 : vector<1x15x128xi1>, vector<1x15x128xf32>
    %141 = arith.mulf %134, %134 : vector<1x15x128xf32>
    %cst_43 = arith.constant dense<0.000000e+00> : vector<1x128xf32>
    %142 = vector.multi_reduction <add>, %141, %cst_43 [1] : vector<1x15x128xf32> to vector<1x128xf32>
    %143 = vector.shape_cast %142 : vector<1x128xf32> to vector<1x1x128xf32>
    %144 = arith.mulf %140, %140 : vector<1x15x128xf32>
    %cst_44 = arith.constant dense<0.000000e+00> : vector<1x128xf32>
    %145 = vector.multi_reduction <add>, %144, %cst_44 [1] : vector<1x15x128xf32> to vector<1x128xf32>
    %146 = vector.shape_cast %145 : vector<1x128xf32> to vector<1x1x128xf32>
    %c0_45 = arith.constant 0 : index
    %c0_46 = arith.constant 0 : index
    %c0_47 = arith.constant 0 : index
    %147 = vector.load %arg2[%c0_45, %c0_46, %c0_47] : memref<1x128x15xf32, #tpu.memory_space<vmem>>, vector<1x128x15xf32>
    %148 = arith.mulf %147, %147 : vector<1x128x15xf32>
    %cst_48 = arith.constant dense<0.000000e+00> : vector<1x128xf32>
    %149 = vector.multi_reduction <add>, %148, %cst_48 [2] : vector<1x128x15xf32> to vector<1x128xf32>
    %150 = vector.shape_cast %149 : vector<1x128xf32> to vector<1x128x1xf32>
    %cst_49 = arith.constant -2.000000e+00 : f32
    %151 = vector.broadcast %cst_49 : f32 to vector<1x128x15xf32>
    %152 = arith.mulf %151, %147 : vector<1x128x15xf32>
    "tpu.trace_start"() <{level = 10 : i32, message = "bnf,bfm->bnm"}> : () -> ()
    %cst_50 = arith.constant dense<0.000000e+00> : vector<1x128x128xf32>
    %153 = tpu.matmul %152, %134, %cst_50 {dimension_numbers = #tpu.dot_dimension_numbers<[2], [1], [1], [2], [0, 0, 0, 1, 1, 2], [0], [0]>} : vector<1x128x15xf32>, vector<1x15x128xf32>, vector<1x128x128xf32> -> vector<1x128x128xf32>
    "tpu.trace_stop"() : () -> ()
    %154 = vector.broadcast %143 : vector<1x1x128xf32> to vector<1x128x128xf32>
    %155 = arith.addf %153, %154 : vector<1x128x128xf32>
    "tpu.trace_start"() <{level = 10 : i32, message = "bnf,bfm->bnm"}> : () -> ()
    %cst_51 = arith.constant dense<0.000000e+00> : vector<1x128x128xf32>
    %156 = tpu.matmul %152, %140, %cst_51 {dimension_numbers = #tpu.dot_dimension_numbers<[2], [1], [1], [2], [0, 0, 0, 1, 1, 2], [0], [0]>} : vector<1x128x15xf32>, vector<1x15x128xf32>, vector<1x128x128xf32> -> vector<1x128x128xf32>
    "tpu.trace_stop"() : () -> ()
    %157 = vector.broadcast %146 : vector<1x1x128xf32> to vector<1x128x128xf32>
    %158 = arith.addf %156, %157 : vector<1x128x128xf32>
    %159 = arith.minimumf %155, %158 : vector<1x128x128xf32>
    %cst_52 = arith.constant dense<0x7F800000> : vector<1x128xf32>
    %160 = vector.multi_reduction <minimumf>, %159, %cst_52 [2] : vector<1x128x128xf32> to vector<1x128xf32>
    %161 = vector.shape_cast %160 : vector<1x128xf32> to vector<1x128x1xf32>
    %162 = arith.addf %161, %150 : vector<1x128x1xf32>
    %cst_53 = arith.constant 0.000000e+00 : f32
    %163 = vector.broadcast %cst_53 : f32 to vector<1x128x1xf32>
    %164 = arith.maximumf %162, %163 : vector<1x128x1xf32>
    %165 = math.sqrt %164 : vector<1x128x1xf32>
    %166 = arith.mulf %2, %23 : vector<1x1x128xf32>
    "tpu.trace_start"() <{level = 10 : i32, message = "bkn,bnj->bkj"}> : () -> ()
    %cst_54 = arith.constant dense<0.000000e+00> : vector<1x1x1xf32>
    %167 = tpu.matmul %166, %165, %cst_54 {dimension_numbers = #tpu.dot_dimension_numbers<[2], [1], [1], [2], [0, 0, 0, 1, 1, 2], [0], [0]>} : vector<1x1x128xf32>, vector<1x128x1xf32>, vector<1x1x1xf32> -> vector<1x1x1xf32>
    "tpu.trace_stop"() : () -> ()
    %168 = arith.divf %167, %43 : vector<1x1x1xf32>
    %169 = tpu.concatenate %90, %128, %168 in 2 : vector<1x1x1xf32>, vector<1x1x1xf32>, vector<1x1x1xf32> -> vector<1x1x3xf32>
    %c0_55 = arith.constant 0 : index
    %c0_56 = arith.constant 0 : index
    %c0_57 = arith.constant 0 : index
    %170 = vector.load %arg6[%c0_55, %c0_56, %c0_57] : memref<1x1x3xf32, #tpu.memory_space<vmem>>, vector<1x1x3xf32>
    tpu.vector_store %arg6[%c0_55, %c0_56, %c0_57], %169 {strides = array<i32>} : memref<1x1x3xf32, #tpu.memory_space<vmem>>, vector<1x1x3xf32>,
    return
  }
  func.func @transform_0(%arg0: i32) -> (i32, i32, i32) {
    %c0_i32 = arith.constant 0 : i32
    %c0_i32_0 = arith.constant 0 : i32
    %c0_i32_1 = arith.constant 0 : i32
    return %arg0, %c0_i32, %c0_i32_0 : i32, i32, i32
  }
  func.func @transform_1(%arg0: i32) -> (i32, i32, i32) {
    %c0_i32 = arith.constant 0 : i32
    %c0_i32_0 = arith.constant 0 : i32
    %c0_i32_1 = arith.constant 0 : i32
    return %arg0, %c0_i32, %c0_i32_0 : i32, i32, i32
  }
  func.func @transform_2(%arg0: i32) -> (i32, i32, i32) {
    %c0_i32 = arith.constant 0 : i32
    %c0_i32_0 = arith.constant 0 : i32
    %c0_i32_1 = arith.constant 0 : i32
    return %arg0, %c0_i32, %c0_i32_0 : i32, i32, i32
  }
  func.func @transform_3(%arg0: i32) -> (i32, i32, i32) {
    %c0_i32 = arith.constant 0 : i32
    %c0_i32_0 = arith.constant 0 : i32
    %c0_i32_1 = arith.constant 0 : i32
    return %arg0, %c0_i32, %c0_i32_0 : i32, i32, i32
  }
  func.func @transform_4(%arg0: i32) -> (i32, i32) {
    %c0_i32 = arith.constant 0 : i32
    %c0_i32_0 = arith.constant 0 : i32
    %c0_i32_1 = arith.constant 0 : i32
    return %c0_i32, %c0_i32_0 : i32, i32
  }
  func.func @transform_5(%arg0: i32) -> (i32, i32, i32) {
    %c0_i32 = arith.constant 0 : i32
    %c0_i32_0 = arith.constant 0 : i32
    %c0_i32_1 = arith.constant 0 : i32
    return %arg0, %c0_i32, %c0_i32_0 : i32, i32, i32
  }
}

</mosaic_0001>

<bundles_post_ra>
// kernel: tpu_custom_call.1
= control target key start
LH: loop header
LB: loop body
LE: loop exit
PB: predicated region body
PF: predicated region fallthrough
CT: control target
= control target key end

     0   :  { %10 = vsyncpa [#allocation3], 0  ;;  %s3170_s0 = inlined_call_operand.vmem [shape: f32[2,14,128], index: 0, kind: input, shape index: {}]   ;;  %s3171_s1 = inlined_call_operand.vmem [shape: f32[2,128,15], index: 1, kind: input, shape index: {}]   ;;  %s3172_s2 = inlined_call_operand.vmem [shape: f32[2,64,3], index: 2, kind: input, shape index: {}]   ;;  %s3173_s3 = inlined_call_operand.vmem [shape: f32[2,31,64], index: 3, kind: input, shape index: {}]   ;;  %s3174_s4 = inlined_call_operand.vmem [shape: f32[10,3], index: 4, kind: input, shape index: {}]   ;;  %s3175_s5 = inlined_call_operand.hbm [shape: f32[2,1,3], index: 5, kind: output, shape index: {}]  }
   0x1   :  { %12 = vsyncpa [#allocation3 + $0x1], 0  ;;  %s2461_s18 = smov 0   ;;  %s2463_s19 = smov 0  }
   0x2   :  { %s2465_s20 = smov 0   ;;  %s2467_s21 = smov 0  }
   0x3 LB: > { %s2482_s22 = sadd.s32 4294967295, %s2419_s21   ;;  %s1807_s23 = sadd.s32 4294967294, %s2419_s21   ;;  %s2419_s21 = sphi %s2467_s21, %s3183_s21   ;;  %s2415_s20 = sphi %s2465_s20, %s3182_s20   ;;  %s2411_s19 = sphi %s2463_s19, %s3181_s19   ;;  %s2407_s18 = sphi %s2461_s18, %s3180_s18  }
   0x4   : > { %s2486_s24 = sadd.s32 1, %s2419_s21   ;;  %s150_s25 = sadd.s32 1, %s2415_s20 }
   0x5   : > { %s147_s26 = ssub.s32 %s2419_s21, %s2486_s24  ;;  %p160_p0 = scmp.ne.s32.totalorder %s2415_s20, %s2411_s19 }
   0x6   : > { %p148_p1 = scmp.eq.s32.totalorder %s147_s26, 0  ;;  %p161_p2 = scmp.eq.s32.totalorder %s2482_s22, 1 }
   0x7   : > { %p166_p3 = scmp.ne.s32.totalorder %s2411_s19, %s2407_s18  ;;  %p167_p4 = scmp.eq.s32.totalorder %s1807_s23, 1 }
   0x8   : > { %s2497_s27 = scalar_select %p148_p1, %s2415_s20, %s150_s25  }
   0x9   : > { %p2499_p5 = por %p161_p2, %p160_p0  ;;  %p2503_p6 = por %p167_p4, %p166_p3 }
   0xa   : > { %p1810_p7 = scmp.ge.s32.totalorder %s2419_s21, 1  ;;  %p220_p8 = scmp.lt.s32.totalorder %s2419_s21, 3 }
   0xc   : > { %p221_p9 = pnand %p1810_p7, %p220_p8 }
   0xd   : > { %p262_p10 = scmp.lt.s32.totalorder (!%p221_p9), %s2482_s22, 1  ;;  %vm300_vm0 = vcmask (!%p221_p9), 23552   ;;  %vm334_vm1 = vcmask (!%p221_p9), 1042432   ;;  %vm361_vm2 = vcmask (!%p221_p9), 1043456   ;;  %vm336_vm3 = vcmask (!%p221_p9), 31744   ;;  %s260_s11 = sand.u32 (!%p221_p9), 1, %s2411_s19  }
   0xe   : > { %224 = sbr.rel (%p221_p9) target bundleno = 1440 (0x5a0), region = 40  ;;  %v495_v43 = vlaneseq (!%p221_p9)  ;;  %v2421_v47 = vmov (!%p221_p9), 0.0|0.0   ;;  %v2422_v48 = vmov (!%p221_p9), 1.0|1.0   ;;  %v2424_v63 = vmov (!%p221_p9), 0.0   ;;  %s1918_s12 = sshll.u32 (!%p221_p9), %s2482_s22, 4 }
   0xf   : > { %2194 = vmatprep.subr.bf16.mxu0 (!%p221_p9), %v2421_v47  ;;  %s2430_s25 = smov (!%p221_p9), [#allocation2]  }
  0x10   : > { %v2554_v44 = vshrl.u32 (!%p221_p9), %v495_v43, 7  ;;  %v693_v46 = vand.u32 (!%p221_p9), 127, %v495_v43  ;;  %s2361_s26 = sshll.u32 (!%p221_p9), %s2430_s25, 4  ;;  %s2362_s26 = int_to_ptr.vmem [resolvable:$false] %s2361_s26 }
  0x12   : > { %v2557_v45 = vadd.s32 (!%p221_p9), 8, %v2554_v44  ;;  %vm694_vm4 = vcmp.le.s32.totalorder (!%p221_p9), %v2554_v44, %v693_v46  ;;  %v2564_v49 = vadd.s32 (!%p221_p9), 16, %v2554_v44  ;;  %v2567_v50 = vadd.s32 (!%p221_p9), 24, %v2554_v44 }
  0x13   : > { %v2574_v51 = vadd.s32 (!%p221_p9), 32, %v2554_v44  ;;  %v2577_v52 = vadd.s32 (!%p221_p9), 40, %v2554_v44  ;;  %v2581_v53 = vadd.s32 (!%p221_p9), 48, %v2554_v44  ;;  %v2584_v54 = vadd.s32 (!%p221_p9), 56, %v2554_v44 }
  0x14   : > { %vm695_vm5 = vcmp.le.s32.totalorder (!%p221_p9), %v2557_v45, %v693_v46  ;;  %vm696_vm7 = vcmp.le.s32.totalorder (!%p221_p9), %v2564_v49, %v693_v46  ;;  %vm697_vm8 = vcmp.le.s32.totalorder (!%p221_p9), %v2567_v50, %v693_v46  ;;  %v684_v55 = vadd.s32 (!%p221_p9), 64, %v2554_v44 }
  0x15   : > { %s2511_s30 = scalar_select %p262_p10, %s2482_s22, 1  ;;  %vm2195_vm6 = vmpackc.low %vm695_vm5, %vm694_vm4  ;;  %vm698_vm10 = vcmp.le.s32.totalorder %v2574_v51, %v693_v46  ;;  %vm699_vm11 = vcmp.le.s32.totalorder %v2577_v52, %v693_v46  ;;  %vm700_vm13 = vcmp.le.s32.totalorder %v2581_v53, %v693_v46  ;;  %vm701_vm14 = vcmp.le.s32.totalorder %v2584_v54, %v693_v46 }
  0x16   : > { %2196 = vmatpush3.bf16.msk.msra.mxu0 %vm2195_vm6, %v2422_v48  ;;  %vm2198_vm9 = vmpackc.low %vm697_vm8, %vm696_vm7  ;;  %v685_v56 = vadd.s32 72, %v2554_v44  ;;  %v686_v57 = vadd.s32 80, %v2554_v44  ;;  %v687_v58 = vadd.s32 88, %v2554_v44  ;;  %v688_v59 = vadd.s32 96, %v2554_v44  ;;  %s1704_s22 = scalar_lea.sflag [#allocation3], %s260_s11 }
  0x17   : > { %s1923_s6 = sshll.u32 %s2511_s30, 6  ;;  %s1921_s10 = sshll.u32 %s2511_s30, 4  ;;  %2197 = vmatprep.subr.bf16.mxu0 %v2421_v47  ;;  %vm2201_vm12 = vmpackc.low %vm699_vm11, %vm698_vm10  ;;  %v689_v60 = vadd.s32 104, %v2554_v44  ;;  %v690_v61 = vadd.s32 112, %v2554_v44  ;;  %v691_v62 = vadd.s32 120, %v2554_v44 }
  0x18   : > { %s276_s9 = scalar_lea.vmem %s3172_s2, %s1923_s6  ;;  %s2529_s13 = scalar_lea.vmem %s3170_s0, %s1921_s10  ;;  %vm2204_vm15 = vmpackc.low %vm701_vm14, %vm700_vm13  ;;  %vm704_vm5 = vcmp.le.s32.totalorder %v686_v57, %v693_v46  ;;  %vm705_vm6 = vcmp.le.s32.totalorder %v687_v58, %v693_v46  ;;  %vm706_vm8 = vcmp.le.s32.totalorder %v688_v59, %v693_v46  ;;  %vm2423_vm14 = vmmov 0  }
  0x19   : > { %v284_v0 = vld [vmem:[%s276_s9] sm:$0xff]  ;;  %v286_v1 = vld [vmem:[%s276_s9 + $0x10] sm:$0xff]  ;;  %v285_v2 = vld [vmem:[%s276_s9 + $0x8] sm:$0xff]  ;;  %vm708_vm11 = vcmp.le.s32.totalorder %v690_v61, %v693_v46  ;;  %2084 = vmatprep.mubr.msk.f32.mxu0 %vm2423_vm14, %v2424_v63  ;;  %s1924_s14 = sshll.u32 %s2511_s30, 5  ;;  %s1922_s23 = sshll.u32 %s2511_s30, 7 }
  0x1a   : > { %v292_v3 = vmul.f32 %v284_v0, %v284_v0  ;;  %v294_v4 = vmul.f32 %v286_v1, %v286_v1  ;;  %v293_v5 = vmul.f32 %v285_v2, %v285_v2  ;;  %v287_v6 = vld [vmem:[%s276_s9 + $0x18] sm:$0xff]  ;;  %v288_v8 = vld [vmem:[%s276_s9 + $0x20] sm:$0xff]  ;;  %v289_v9 = vld [vmem:[%s276_s9 + $0x28] sm:$0xff]  ;;  %2199 = vmatpush3.bf16.msk.msra.mxu0 %vm2198_vm9, %v2422_v48  ;;  %vm707_vm9 = vcmp.le.s32.totalorder %v689_v60, %v693_v46  ;;  %s2615_s17 = scalar_lea.vmem %s3173_s3, %s1924_s14  ;;  %s2663_s6 = scalar_lea.vmem %s3171_s1, %s1922_s23 }
  0x1b   : > { %v295_v7 = vmul.f32 %v287_v6, %v287_v6  ;;  %v296_v14 = vmul.f32 %v288_v8, %v288_v8  ;;  %v297_v15 = vmul.f32 %v289_v9, %v289_v9  ;;  %v290_v16 = vld [vmem:[%s276_s9 + $0x30] sm:$0xff]  ;;  %v291_v17 = vld [vmem:[%s276_s9 + $0x38] sm:$0xff]  ;;  %v2532_v24 = vld [vmem:[%s2529_s13] sm:$0xff]  ;;  %2200 = vmatprep.subr.bf16.mxu0 %v2421_v47  ;;  %s2429_s10 = smov 2  }
  0x1c   : > { %v301_v10 = vsel %vm300_vm0, %v292_v3, 0.0  ;;  %v307_v11 = vsel %vm300_vm0, %v294_v4, 0.0  ;;  %v304_v12 = vsel %vm300_vm0, %v293_v5, 0.0  ;;  %v298_v20 = vmul.f32 %v290_v16, %v290_v16  ;;  %vm2210_vm7 = vmpackc.low %vm705_vm6, %vm704_vm5 }
  0x1d   : > { %302 = vadd.xlane.f32.xlu0 %v301_v10  ;;  %308 = vadd.xlane.f32.xlu1 %v307_v11  ;;  %v310_v13 = vsel %vm300_vm0, %v295_v7, 0.0  ;;  %v313_v18 = vsel %vm300_vm0, %v296_v14, 0.0  ;;  %v316_v19 = vsel %vm300_vm0, %v297_v15, 0.0  ;;  %v299_v21 = vmul.f32 %v291_v17, %v291_v17  ;;  %vm2213_vm10 = vmpackc.low %vm707_vm9, %vm706_vm8 }
  0x1e   : > { %v319_v22 = vsel %vm300_vm0, %v298_v20, 0.0  ;;  %v333_v25 = vmul.f32 -2.0, %v2532_v24  ;;  %2202 = vmatpush3.bf16.msk.msra.mxu0 %vm2201_vm12, %v2422_v48  ;;  %vm709_vm12 = vcmp.le.s32.totalorder %v691_v62, %v693_v46  ;;  %v470_v3 = vmul.f32 %v2532_v24, %v2532_v24 }
  0x1f   : > { %v322_v23 = vsel %vm300_vm0, %v299_v21, 0.0  ;;  %2203 = vmatprep.subr.bf16.mxu0 %v2421_v47  ;;  %vm2216_vm13 = vmpackc.low %vm709_vm12, %vm708_vm11 }
  0x20   : > { %v335_v26 = vsel %vm334_vm1, %v333_v25, 1.0 }
  0x21   : > { %305 = vadd.xlane.f32.xlu0 %v304_v12  ;;  %311 = vadd.xlane.f32.xlu1 %v310_v13 }
  0x22   : > { %2016 = vmatprep.subr.msk.mxu1 %vm361_vm2, %v335_v26  ;;  %2205 = vmatpush3.bf16.msk.msra.mxu0 %vm2204_vm15, %v2422_v48  ;;  %vm571_vm15 = vcmask 523264  }
  0x23   : > { %2017 = vmatpush3.msk.msra.mxu1 %vm361_vm2, %v335_v26  ;;  %2206 = vmatprep.subr.bf16.mxu0 %v2421_v47 }
  0x25   : > { %314 = vadd.xlane.f32.xlu0 %v313_v18  ;;  %317 = vadd.xlane.f32.xlu1 %v316_v19 }
  0x29   : > { %320 = vadd.xlane.f32.xlu0 %v319_v22  ;;  %323 = vadd.xlane.f32.xlu1 %v322_v23 }
  0xaa   : > { %v303_v27 = vpop.xlane.xlu0 %302  ;;  %v309_v28 = vpop.xlane.xlu1 %308 }
  0xab   : > { %v325_v29 = vsel %vm300_vm0, %v284_v0, %v303_v27  ;;  %v327_v30 = vsel %vm300_vm0, %v286_v1, %v309_v28  ;;  %v567_v0 = vld [vmem:[%s2615_s17] sm:$0xff] }
  0xac   : > { %2018 = vmatprep.mubr.msk.f32.mxu1 %vm336_vm3, %v325_v29 }
  0xae   : > { %v306_v31 = vpop.xlane.xlu0 %305  ;;  %v312_v32 = vpop.xlane.xlu1 %311 }
  0xaf   : > { %v326_v33 = vsel %vm300_vm0, %v285_v2, %v306_v31  ;;  %v328_v34 = vsel %vm300_vm0, %v287_v6, %v312_v32  ;;  %v471_v6 = vsel %vm334_vm1, %v470_v3, 0.0 }
  0xb0   : > { %2019 = vmatmul.mubr.msk.f32.vlgmr.msra.gmra.mrb[0].mxu1 %vm336_vm3, %v326_v33  ;;  %v472_v11 = vrot.slane %v471_v6, 4 }
  0xb1   : > { %2021 = vmatprep.mubr.msk.f32.mxu1 %vm336_vm3, %v327_v30 }
  0xb2   : > { %v315_v35 = vpop.xlane.xlu0 %314  ;;  %v318_v36 = vpop.xlane.xlu1 %317 }
  0xb3   : > { %v329_v37 = vsel %vm300_vm0, %v288_v8, %v315_v35  ;;  %v330_v38 = vsel %vm300_vm0, %v289_v9, %v318_v36 }
  0xb4   : > { %2022 = vmatmul.mubr.msk.f32.gmra.mrb[2].mxu1 %vm336_vm3, %v328_v34 }
  0xb5   : > { %2024 = vmatprep.mubr.msk.f32.mxu1 %vm336_vm3, %v329_v37 }
  0xb6   : > { %v321_v39 = vpop.xlane.xlu0 %320  ;;  %v324_v40 = vpop.xlane.xlu1 %323 }
  0xb7   : > { %v331_v41 = vsel %vm300_vm0, %v290_v16, %v321_v39  ;;  %v332_v42 = vsel %vm300_vm0, %v291_v17, %v324_v40  ;;  %vm702_vm0 = vcmp.le.s32.totalorder %v684_v55, %v693_v46  ;;  %v473_v17 = vadd.f32 %v472_v11, %v471_v6 }
  0xb8   : > { %2025 = vmatmul.mubr.msk.f32.gmra.mrb[4].mxu1 %vm336_vm3, %v330_v38 }
  0xb9   : > { %2027 = vmatprep.mubr.msk.f32.mxu1 %vm336_vm3, %v331_v41  ;;  %v474_v20 = vrot.slane %v473_v17, 2 }
  0xbb   : > { %v475_v23 = vadd.f32 %v474_v20, %v473_v17  ;;  %v2710_v20 = vld [vmem:[%s2663_s6 + $0x40] sm:$0xff] }
  0xbc   : > { %2028 = vmatmul.mubr.msk.f32.gmra.mrb[6].mxu1 %vm336_vm3, %v332_v42  ;;  %vm703_vm3 = vcmp.le.s32.totalorder %v685_v56, %v693_v46 }
  0xbd   : > { %vm2207_vm4 = vmpackc.low %vm703_vm3, %vm702_vm0  ;;  %2046 = vmatprep.mubr.msk.f32.mxu1 %vm571_vm15, %v567_v0  ;;  %v476_v27 = vrot.slane %v475_v23, 1 }
  0xbe   : > { %2208 = vmatpush3.bf16.msk.msra.mxu0 %vm2207_vm4, %v2422_v48 }
  0xbf   : > { %2209 = vmatprep.subr.bf16.mxu0 %v2421_v47  ;;  %v477_v30 = vadd.f32 %v476_v27, %v475_v23  ;;  %v2722_v27 = vld [vmem:[%s2663_s6 + $0x50] sm:$0xff] }
  0xc2   : > { %2211 = vmatpush3.bf16.msk.msra.mxu0 %vm2210_vm7, %v2422_v48 }
  0xc3   : > { %2212 = vmatprep.subr.bf16.mxu0 %v2421_v47 }
  0xc6   : > { %2214 = vmatpush3.bf16.msk.msra.mxu0 %vm2213_vm10, %v2422_v48 }
  0xc7   : > { %2215 = vmatprep.subr.bf16.mxu0 %v2421_v47 }
  0xca   : > { %2217 = vmatpush3.bf16.msk.msra.mxu0 %vm2216_vm13, %v2422_v48 }
 0x183   : > { %v2020_v1 = vpop.f32.mrb[0].mxu1 }
 0x184   : > { %v431_v2 = vpop.f32.mrb[1].mxu1 }
 0x187   : > { %v2023_v4 = vpop.f32.mrb[2].mxu1 }
 0x188   : > { %v441_v5 = vpop.f32.mrb[3].mxu1 }
 0x18b   : > { %v2026_v7 = vpop.f32.mrb[4].mxu1 }
 0x18c   : > { %v479_v8 = vmin.f32 %v2020_v1, %v2026_v7  ;;  %v451_v9 = vpop.f32.mrb[5].mxu1 }
 0x18d   : > { %v478_v10 = vmin.f32 %v431_v2, %v451_v9 }
 0x18f   : > { %v482_v12 = vmin.f32 %v478_v10, %v479_v8  ;;  %v2029_v13 = vpop.f32.mrb[6].mxu1  ;;  %v2686_v8 = vld [vmem:[%s2663_s6 + $0x20] sm:$0xff] }
 0x190   : > { %v481_v14 = vmin.f32 %v2023_v4, %v2029_v13  ;;  %v461_v15 = vpop.f32.mrb[7].mxu1 }
 0x191   : > { %v480_v16 = vmin.f32 %v441_v5, %v461_v15 }
 0x193   : > { %v483_v18 = vmin.f32 %v480_v16, %v481_v14  ;;  %v2698_v14 = vld [vmem:[%s2663_s6 + $0x30] sm:$0xff] }
 0x195   : > { %v484_v19 = vmin.f32 %v482_v12, %v483_v18 }
 0x197   : > { %v485_v21 = vrot.slane %v484_v19, 4 }
 0x199   : > { %v486_v22 = vmin.f32 %v484_v19, %v485_v21  ;;  %v1001_v19 = vmul.f32 %v2698_v14, %v2698_v14  ;;  %v2713_v21 = vld [vmem:[%s2663_s6 + $0x48] sm:$0xff] }
 0x19b   : > { %v487_v25 = vrot.slane %v486_v22, 2 }
 0x19d   : > { %v488_v26 = vmin.f32 %v486_v22, %v487_v25  ;;  %v1004_v25 = vmul.f32 %v2713_v21, %v2713_v21 }
 0x19f   : > { %v489_v28 = vrot.slane %v488_v26, 1 }
 0x1a1   : > { %v490_v29 = vmin.f32 %v488_v26, %v489_v28  ;;  %v1003_v26 = vmul.f32 %v2710_v20, %v2710_v20  ;;  %v2725_v28 = vld [vmem:[%s2663_s6 + $0x58] sm:$0xff] }
 0x1a3   : > { %vm504_vm1 = vcmp.le.f32.partialorder %v431_v2, %v490_v29  ;;  %vm505_vm0 = vcmp.le.f32.partialorder %v2020_v1, %v490_v29  ;;  %vm506_vm3 = vcmp.le.f32.partialorder %v441_v5, %v490_v29  ;;  %vm507_vm4 = vcmp.le.f32.partialorder %v2023_v4, %v490_v29 }
 0x1a4   : > { %vm508_vm5 = vcmp.le.f32.partialorder %v451_v9, %v490_v29  ;;  %vm509_vm6 = vcmp.le.f32.partialorder %v2026_v7, %v490_v29  ;;  %vm510_vm7 = vcmp.le.f32.partialorder %v461_v15, %v490_v29  ;;  %vm511_vm8 = vcmp.le.f32.partialorder %v2029_v13, %v490_v29  ;;  %v2689_v9 = vld [vmem:[%s2663_s6 + $0x28] sm:$0xff]  ;;  %v2701_v15 = vld [vmem:[%s2663_s6 + $0x38] sm:$0xff] }
 0x1a5   : > { %v512_v31 = vsel %vm504_vm1, %v2554_v44, 64  ;;  %v513_v32 = vsel %vm505_vm0, %v2557_v45, 64  ;;  %v514_v33 = vsel %vm506_vm3, %v2564_v49, 64  ;;  %v515_v34 = vsel %vm507_vm4, %v2567_v50, 64 }
 0x1a6   : > { %v516_v35 = vsel %vm508_vm5, %v2574_v51, 64  ;;  %v517_v36 = vsel %vm509_vm6, %v2577_v52, 64  ;;  %v518_v37 = vsel %vm510_vm7, %v2581_v53, 64  ;;  %v519_v38 = vsel %vm511_vm8, %v2584_v54, 64 }
 0x1a7   : > { %vm520_vm9 = vcmp.lt.s32.totalorder %v512_v31, %v516_v35  ;;  %vm522_vm10 = vcmp.lt.s32.totalorder %v513_v32, %v517_v36  ;;  %vm524_vm11 = vcmp.lt.s32.totalorder %v514_v33, %v518_v37  ;;  %vm526_vm12 = vcmp.lt.s32.totalorder %v515_v34, %v519_v38 }
 0x1a8   : > { %v521_v39 = vsel %vm520_vm9, %v512_v31, %v516_v35  ;;  %v523_v40 = vsel %vm522_vm10, %v513_v32, %v517_v36  ;;  %v525_v41 = vsel %vm524_vm11, %v514_v33, %v518_v37  ;;  %v527_v42 = vsel %vm526_vm12, %v515_v34, %v519_v38  ;;  %v2734_v33 = vld [vmem:[%s2663_s6 + $0x60] sm:$0xff]  ;;  %v2737_v34 = vld [vmem:[%s2663_s6 + $0x68] sm:$0xff] }
 0x1a9   : > { %vm528_vm13 = vcmp.lt.s32.totalorder %v521_v39, %v523_v40  ;;  %vm530_vm1 = vcmp.lt.s32.totalorder %v525_v41, %v527_v42  ;;  %v491_v43 = vadd.f32 %v490_v29, %v477_v30  ;;  %v1000_v12 = vmul.f32 %v2689_v9, %v2689_v9 }
 0x1aa   : > { %v529_v46 = vsel %vm528_vm13, %v521_v39, %v523_v40  ;;  %v531_v55 = vsel %vm530_vm1, %v525_v41, %v527_v42  ;;  %v999_v13 = vmul.f32 %v2686_v8, %v2686_v8  ;;  %v1002_v18 = vmul.f32 %v2701_v15, %v2701_v15 }
 0x1ab   : > { %vm532_vm0 = vcmp.lt.s32.totalorder %v529_v46, %v531_v55  ;;  %vm492_vm3 = vcmp.lt.f32.partialorder %v491_v43, 2.5e-05  ;;  %v1006_v31 = vmul.f32 %v2725_v28, %v2725_v28  ;;  %v1005_v32 = vmul.f32 %v2722_v27, %v2722_v27 }
 0x1ac   : > { %v533_v56 = vsel %vm532_vm0, %v529_v46, %v531_v55  ;;  %v2631_v57 = vsel %vm492_vm3, 1.0, %v2424_v63  ;;  %v1008_v37 = vmul.f32 %v2737_v34, %v2737_v34  ;;  %v1007_v38 = vmul.f32 %v2734_v33, %v2734_v33 }
 0x1ad   : > { %v534_v58 = vrot.slane %v533_v56, 4  ;;  %v2634_v59 = vsub.f32 1.0, %v2631_v57 }
 0x1af   : > { %vm535_vm4 = vcmp.lt.s32.totalorder %v533_v56, %v534_v58  ;;  %2085 = vmatmul.mubr.f32.vlgmr.msra.gmra.mrb[0].mxu0 %v2634_v59 }
 0x1b0   : > { %v536_v60 = vsel %vm535_vm4, %v533_v56, %v534_v58 }
 0x1b1   : > { %v537_v61 = vrot.slane %v536_v60, 2 }
 0x1b3   : > { %vm538_vm5 = vcmp.lt.s32.totalorder %v536_v60, %v537_v61 }
 0x1b4   : > { %v539_v62 = vsel %vm538_vm5, %v536_v60, %v537_v61 }
 0x1b5   : > { %v540_v0 = vrot.slane %v539_v62, 1 }
 0x1b7   : > { %vm541_vm6 = vcmp.lt.s32.totalorder %v539_v62, %v540_v0 }
 0x1b8   : > { %v542_v1 = vsel %vm541_vm6, %v539_v62, %v540_v0  ;;  %vm1011_vm6 = vcmask 121856  }
 0x1b9   : > { %vm543_vm7 = vcmp.eq.s32.totalorder %v2554_v44, %v542_v1  ;;  %vm544_vm8 = vcmp.eq.s32.totalorder %v2557_v45, %v542_v1  ;;  %vm545_vm9 = vcmp.eq.s32.totalorder %v2564_v49, %v542_v1  ;;  %vm546_vm10 = vcmp.eq.s32.totalorder %v2567_v50, %v542_v1  ;;  %v568_v45 = vld [vmem:[%s2615_s17 + $0x8] sm:$0xff]  ;;  %v569_v49 = vld [vmem:[%s2615_s17 + $0x10] sm:$0xff]  ;;  %v570_v50 = vld [vmem:[%s2615_s17 + $0x18] sm:$0x7f]  ;;  %s3128_s17 = scalar_lea.hbm %s3175_s5, %s1918_s12 }
 0x1ba   : > { %vm2178_vm11 = vmpackc.low %vm544_vm8, %vm543_vm7  ;;  %vm547_vm13 = vcmp.eq.s32.totalorder %v2574_v51, %v542_v1  ;;  %vm548_vm1 = vcmp.eq.s32.totalorder %v2577_v52, %v542_v1  ;;  %vm549_vm3 = vcmp.eq.s32.totalorder %v2581_v53, %v542_v1  ;;  %vm550_vm4 = vcmp.eq.s32.totalorder %v2584_v54, %v542_v1  ;;  %v2669_v52 = vld [vmem:[%s2663_s6 + $0x8] sm:$0xff]  ;;  %v2672_v53 = vld [vmem:[%s2663_s6 + $0x10] sm:$0xff] }
 0x1bb   : > { %2179 = vmatprep.subr.msk.bf16.mxu1 %vm2178_vm11, %v2422_v48  ;;  %vm2182_vm12 = vmpackc.low %vm546_vm10, %vm545_vm9  ;;  %v2675_v54 = vld [vmem:[%s2663_s6 + $0x18] sm:$0xff]  ;;  %v996_v2 = vmul.f32 %v2669_v52, %v2669_v52  ;;  %v997_v5 = vmul.f32 %v2672_v53, %v2672_v53  ;;  %v1027_v16 = vsel %vm1011_vm6, %v1000_v12, 0.0  ;;  %v1024_v17 = vsel %vm1011_vm6, %v999_v13, 0.0 }
 0x1bc   : > { %2181 = vmatpush3.bf16.msk.msra.mxu1 %vm2178_vm11, %v2422_v48  ;;  %vm2186_vm0 = vmpackc.low %vm548_vm1, %vm547_vm13  ;;  %v998_v4 = vmul.f32 %v2675_v54, %v2675_v54  ;;  %v1033_v22 = vsel %vm1011_vm6, %v1002_v18, 0.0  ;;  %v1030_v23 = vsel %vm1011_vm6, %v1001_v19, 0.0  ;;  %v1039_v29 = vsel %vm1011_vm6, %v1004_v25, 0.0  ;;  %v994_v25 = vld [vmem:[%s2663_s6 + $0x78] sm:$0xff] }
 0x1bd   : > { %2183 = vmatprep.subr.msk.bf16.mxu1 %vm2182_vm12, %v2422_v48  ;;  %vm2190_vm5 = vmpackc.low %vm550_vm4, %vm549_vm3  ;;  %v1015_v6 = vsel %vm1011_vm6, %v996_v2, 0.0  ;;  %v1018_v11 = vsel %vm1011_vm6, %v997_v5, 0.0  ;;  %v1036_v30 = vsel %vm1011_vm6, %v1003_v26, 0.0  ;;  %v1045_v35 = vsel %vm1011_vm6, %v1006_v31, 0.0 }
 0x1be   : > { %1016 = vadd.xlane.f32.xlu1 %v1015_v6  ;;  %v1021_v10 = vsel %vm1011_vm6, %v998_v4, 0.0  ;;  %v1042_v36 = vsel %vm1011_vm6, %v1005_v32, 0.0  ;;  %v1051_v39 = vsel %vm1011_vm6, %v1008_v37, 0.0  ;;  %v1048_v40 = vsel %vm1011_vm6, %v1007_v38, 0.0 }
 0x1bf   : > { %vm955_vm7 = vcmask 1046528   ;;  %vm2425_vm8 = vmmov 1   ;;  %v1061_v13 = vmul.f32 -2.0, %v2669_v52  ;;  %v1063_v18 = vmul.f32 -2.0, %v2675_v54 }
 0x1c0   : > { %2185 = vmatpush3.bf16.msk.msra.mxu1 %vm2182_vm12, %v2422_v48  ;;  %vm2761_vm9 = vmpackc.low %vm955_vm7, %vm2425_vm8  ;;  %v1064_v52 = vmul.f32 -2.0, %v2686_v8  ;;  %v1066_v19 = vmul.f32 -2.0, %v2698_v14  ;;  %v1067_v54 = vmul.f32 -2.0, %v2701_v15  ;;  %v1068_v8 = vmul.f32 -2.0, %v2710_v20 }
 0x1c1   : > { %2187 = vmatprep.subr.msk.bf16.mxu1 %vm2186_vm0, %v2422_v48  ;;  %v1070_v14 = vmul.f32 -2.0, %v2722_v27  ;;  %v1071_v15 = vmul.f32 -2.0, %v2725_v28  ;;  %v1072_v20 = vmul.f32 -2.0, %v2734_v33  ;;  %v1075_v26 = vmul.f32 -2.0, %v994_v25 }
 0x1c2   : > { %1022 = vadd.xlane.f32.xlu1 %v1021_v10  ;;  %v1010_v27 = vmul.f32 %v994_v25, %v994_v25  ;;  %v2426_v31 = vmov 0  }
 0x1c3   : > { %2303 = vset.pattern.permute.xlu1 %v2426_v31  ;;  %2302 = vset.pattern.permute.xlu0 %v2426_v31 }
 0x1c4   : > { %2189 = vmatpush3.bf16.msk.msra.mxu1 %vm2186_vm0, %v2422_v48 }
 0x1c5   : > { %2191 = vmatprep.subr.msk.bf16.mxu1 %vm2190_vm5, %v2422_v48 }
 0x1c6   : > { %1028 = vadd.xlane.f32.xlu1 %v1027_v16 }
 0x1c8   : > { %2193 = vmatpush3.bf16.msk.msra.mxu1 %vm2190_vm5, %v2422_v48  ;;  %v979_v48 = vld [vmem:[%s2663_s6] sm:$0xff] }
 0x1c9   : > { %v1060_v51 = vmul.f32 -2.0, %v979_v48  ;;  %v995_v3 = vmul.f32 %v979_v48, %v979_v48 }
 0x1ca   : > { %1034 = vadd.xlane.f32.xlu1 %v1033_v22  ;;  %v1073_v22 = vmul.f32 -2.0, %v2737_v34 }
 0x1cb   : > { %2047 = vmatmul.mubr.msk.f32.vlgmr.msra.gmra.mrb[8].mxu1 %vm571_vm15, %v568_v45  ;;  %2119 = vmatprep.mubr.msk.f32.mxu0 %vm1011_vm6, %v1060_v51  ;;  %v1012_v7 = vsel %vm1011_vm6, %v995_v3, 0.0 }
 0x1cc   : > { %2049 = vmatprep.mubr.msk.f32.mxu1 %vm571_vm15, %v569_v49  ;;  %1013 = vadd.xlane.f32.xlu0 %v1012_v7 }
 0x1ce   : > { %1040 = vadd.xlane.f32.xlu1 %v1039_v29  ;;  %v1057_v29 = vsel %vm1011_vm6, %v1010_v27, 0.0 }
 0x1cf   : > { %2050 = vmatmul.mubr.msk.f32.gmra.mrb[10].mxu1 %vm571_vm15, %v570_v50  ;;  %vm944_vm15 = vcmp.gt.f32.partialorder %v2631_v57, 0.0 }
 0x1d0   : > { %2091 = vmatprep.mubr.msk.f32.mxu1 %vm1011_vm6, %v1060_v51  ;;  %1019 = vadd.xlane.f32.xlu0 %v1018_v11 }
 0x1d2   : > { %1046 = vadd.xlane.f32.xlu1 %v1045_v35 }
 0x1d4   : > { %1025 = vadd.xlane.f32.xlu0 %v1024_v17  ;;  %v1062_v17 = vmul.f32 -2.0, %v2672_v53  ;;  %v1065_v53 = vmul.f32 -2.0, %v2689_v9  ;;  %v1069_v9 = vmul.f32 -2.0, %v2713_v21  ;;  %v993_v21 = vld [vmem:[%s2663_s6 + $0x70] sm:$0xff]  ;;  %s2363_s6 = scalar_lea.vmem %s2362_s26, 32 }
 0x1d5   : > { %v1009_v28 = vmul.f32 %v993_v21, %v993_v21 }
 0x1d6   : > { %1052 = vadd.xlane.f32.xlu1 %v1051_v39 }
 0x1d8   : > { %1031 = vadd.xlane.f32.xlu0 %v1030_v23  ;;  %v1074_v23 = vmul.f32 -2.0, %v993_v21 }
 0x1da   : > { %1058 = vadd.xlane.f32.xlu1 %v1057_v29 }
 0x1dc   : > { %1037 = vadd.xlane.f32.xlu0 %v1036_v30  ;;  %v1054_v30 = vsel %vm1011_vm6, %v1009_v28, 0.0 }
 0x1e0   : > { %1043 = vadd.xlane.f32.xlu0 %v1042_v36 }
 0x1e4   : > { %1049 = vadd.xlane.f32.xlu0 %v1048_v40 }
 0x1e8   : > { %1055 = vadd.xlane.f32.xlu0 %v1054_v30 }
 0x282   : > { %v2747_v41 = vpop.f32.mrb[0].mxu0 }
 0x283   : > { %v2086_v42 = vpop.f32.mrb[1].mxu0 }
 0x29e   : > { %v2048_v43 = vpop.f32.mrb[8].mxu1 }
 0x29f   : > { %v948_v46 = vsel %vm944_vm15, %v2048_v43, 100000.0  ;;  %v2752_v55 = vpop.f32.mrb[9].mxu1 }
 0x2a0   : > { %v952_v56 = vmul.f32 %v948_v46, %v948_v46  ;;  %v1079_v58 = vrot.slane %v948_v46, 1  ;;  %v947_v60 = vsel %vm944_vm15, %v2752_v55, 100000.0 }
 0x2a1   : > { %v951_v61 = vmul.f32 %v947_v60, %v947_v60  ;;  %v1078_v62 = vrot.slane %v947_v60, 1 }
 0x2a2   : > { %v957_v0 = vrot.slane %v952_v56, 1  ;;  %v2051_v1 = vpop.f32.mrb[10].mxu1 }
 0x2a3   : > { %v956_v45 = vrot.slane %v951_v61, 1  ;;  %v1080_v49 = vsel %vm955_vm7, %v1078_v62, %v1079_v58  ;;  %v950_v50 = vsel %vm944_vm15, %v2051_v1, 100000.0  ;;  %v660_v48 = vpop.f32.mrb[11].mxu1 }
 0x2a4   : > { %v961_v2 = vsel %vm955_vm7, %v957_v0, 0.0  ;;  %v970_v3 = vmul.f32 %v950_v50, %v950_v50  ;;  %v949_v4 = vsel %vm944_vm15, %v660_v48, 100000.0  ;;  %v2218_v5 = vpack.c.bf16 %v1079_v58, %v1080_v49 }
 0x2a5   : > { %v958_v6 = vsel %vm955_vm7, %v956_v45, %v957_v0  ;;  %v969_v7 = vmul.f32 %v949_v4, %v949_v4  ;;  %v2224_v10 = vpack.c.bf16 %v950_v50, %v949_v4 }
 0x2a6   : > { %v2769_v11 = vadd.f32 %v961_v2, %v958_v6  ;;  %v971_v12 = vsel %vm955_vm7, %v970_v3, 0.0  ;;  %2220 = vmatprep.subr.msk.bf16.mxu1 %vm2761_vm9, %v2218_v5 }
 0x2a7   : > { %v2775_v16 = vadd.f32 %v971_v12, %v969_v7  ;;  %2223 = vmatpush3.bf16.msk.msra.mxu1 %vm2761_vm9, %v2218_v5  ;;  %2226 = vmatprep.subr.msk.bf16.mxu0 %vm2761_vm9, %v2224_v10 }
 0x2a8   : > { %2229 = vmatpush3.bf16.msk.msra.mxu0 %vm2761_vm9, %v2224_v10  ;;  %2230 = vmatprep.subr.bf16.mxu1 %v2421_v47  ;;  %v963_v32 = vrot.slane %v2769_v11, 4 }
 0x2a9   : > { %v973_v33 = vrot.slane %v2775_v16, 4 }
 0x2aa   : > { %2092 = vmatmul.mubr.msk.f32.vlgmr.msra.gmra.mrb[12].mxu1 %vm1011_vm6, %v1061_v13  ;;  %v964_v34 = vadd.f32 %v963_v32, %v2769_v11 }
 0x2ab   : > { %2120 = vmatmul.mubr.msk.f32.vlgmr.msra.gmra.mrb[2].mxu0 %vm1011_vm6, %v1061_v13  ;;  %2094 = vmatprep.mubr.msk.f32.mxu1 %vm1011_vm6, %v1062_v17  ;;  %v974_v35 = vadd.f32 %v973_v33, %v2775_v16 }
 0x2ac   : > { %2122 = vmatprep.mubr.msk.f32.mxu0 %vm1011_vm6, %v1062_v17  ;;  %v965_v36 = vrot.slane %v964_v34, 2 }
 0x2ad   : > { %v975_v37 = vrot.slane %v974_v35, 2 }
 0x2ae   : > { %2095 = vmatmul.mubr.msk.f32.gmra.mrb[14].mxu1 %vm1011_vm6, %v1063_v18  ;;  %v966_v38 = vadd.f32 %v965_v36, %v964_v34 }
 0x2af   : > { %2123 = vmatmul.mubr.msk.f32.gmra.mrb[4].mxu0 %vm1011_vm6, %v1063_v18  ;;  %2097 = vmatprep.mubr.msk.f32.mxu1 %vm1011_vm6, %v1064_v52  ;;  %v976_v39 = vadd.f32 %v975_v37, %v974_v35 }
 0x2b0   : > { %2125 = vmatprep.mubr.msk.f32.mxu0 %vm1011_vm6, %v1064_v52  ;;  %v967_v40 = vrot.slane %v966_v38, 1 }
 0x2b1   : > { %v977_v42 = vrot.slane %v976_v39, 1 }
 0x2b2   : > { %2098 = vmatmul.mubr.msk.f32.gmra.mrb[16].mxu1 %vm1011_vm6, %v1065_v53  ;;  %v2836_v43 = vadd.f32 %v967_v40, %v966_v38 }
 0x2b3   : > { %2126 = vmatmul.mubr.msk.f32.gmra.mrb[6].mxu0 %vm1011_vm6, %v1065_v53  ;;  %2100 = vmatprep.mubr.msk.f32.mxu1 %vm1011_vm6, %v1066_v19  ;;  %v2838_v46 = vadd.f32 %v977_v42, %v976_v39 }
 0x2b4   : > { %2128 = vmatprep.mubr.msk.f32.mxu0 %vm1011_vm6, %v1066_v19 }
 0x2b6   : > { %2101 = vmatmul.mubr.msk.f32.gmra.mrb[18].mxu1 %vm1011_vm6, %v1067_v54 }
 0x2b7   : > { %2129 = vmatmul.mubr.msk.f32.gmra.mrb[8].mxu0 %vm1011_vm6, %v1067_v54  ;;  %2103 = vmatprep.mubr.msk.f32.mxu1 %vm1011_vm6, %v1068_v8 }
 0x2b8   : > { %2131 = vmatprep.mubr.msk.f32.mxu0 %vm1011_vm6, %v1068_v8 }
 0x2ba   : > { %2104 = vmatmul.mubr.msk.f32.gmra.mrb[20].mxu1 %vm1011_vm6, %v1069_v9 }
 0x2bb   : > { %2132 = vmatmul.mubr.msk.f32.gmra.mrb[10].mxu0 %vm1011_vm6, %v1069_v9  ;;  %2106 = vmatprep.mubr.msk.f32.mxu1 %vm1011_vm6, %v1070_v14 }
 0x2bc   : > { %2134 = vmatprep.mubr.msk.f32.mxu0 %vm1011_vm6, %v1070_v14 }
 0x2be   : > { %2107 = vmatmul.mubr.msk.f32.gmra.mrb[22].mxu1 %vm1011_vm6, %v1071_v15 }
 0x2bf   : > { %2135 = vmatmul.mubr.msk.f32.gmra.mrb[12].mxu0 %vm1011_vm6, %v1071_v15  ;;  %2109 = vmatprep.mubr.msk.f32.mxu1 %vm1011_vm6, %v1072_v20 }
 0x2c0   : > { %2137 = vmatprep.mubr.msk.f32.mxu0 %vm1011_vm6, %v1072_v20 }
 0x2c2   : > { %2110 = vmatmul.mubr.msk.f32.gmra.mrb[24].mxu1 %vm1011_vm6, %v1073_v22 }
 0x2c3   : > { %2138 = vmatmul.mubr.msk.f32.gmra.mrb[14].mxu0 %vm1011_vm6, %v1073_v22  ;;  %2112 = vmatprep.mubr.msk.f32.mxu1 %vm1011_vm6, %v1074_v23 }
 0x2c4   : > { %2140 = vmatprep.mubr.msk.f32.mxu0 %vm1011_vm6, %v1074_v23 }
 0x2c6   : > { %2113 = vmatmul.mubr.msk.f32.gmra.mrb[26].mxu1 %vm1011_vm6, %v1075_v26 }
 0x2c7   : > { %2141 = vmatmul.mubr.msk.f32.gmra.mrb[16].mxu0 %vm1011_vm6, %v1075_v26  ;;  %2175 = vmatprep.mubr.msk.f32.mxu1 %vm2423_vm14, %v2424_v63  ;;  %vm821_vm14 = vcmask 1043459  }
 0x37d   : > { %v2093_v56 = vpop.f32.mrb[12].mxu1 }
 0x37e   : > { %v1204_v58 = vadd.f32 %v2093_v56, %v2836_v43  ;;  %v1198_v60 = vpop.f32.mrb[13].mxu1  ;;  %v2121_v61 = vpop.f32.mrb[2].mxu0 }
 0x37f   : > { %v1199_v62 = vadd.f32 %v1198_v60, %v2836_v43  ;;  %v1352_v0 = vadd.f32 %v2121_v61, %v2838_v46  ;;  %v1346_v1 = vpop.f32.mrb[3].mxu0 }
 0x380   : > { %v1347_v45 = vadd.f32 %v1346_v1, %v2838_v46 }
 0x381   : > { %v2096_v49 = vpop.f32.mrb[14].mxu1  ;;  %v1426_v50 = vmin.f32 %v1204_v58, %v1352_v0 }
 0x382   : > { %v1214_v48 = vadd.f32 %v2096_v49, %v2836_v43  ;;  %v1208_v51 = vpop.f32.mrb[15].mxu1  ;;  %v2124_v2 = vpop.f32.mrb[4].mxu0  ;;  %v1425_v3 = vmin.f32 %v1199_v62, %v1347_v45 }
 0x383   : > { %v1209_v4 = vadd.f32 %v1208_v51, %v2836_v43  ;;  %v1362_v5 = vadd.f32 %v2124_v2, %v2838_v46  ;;  %1443 = vmin.xlane.f32.xlu1 %v1426_v50  ;;  %v1356_v6 = vpop.f32.mrb[5].mxu0 }
 0x384   : > { %v1357_v7 = vadd.f32 %v1356_v6, %v2838_v46  ;;  %1441 = vmin.xlane.f32.xlu0 %v1425_v3 }
 0x385   : > { %v2099_v10 = vpop.f32.mrb[16].mxu1  ;;  %v1428_v11 = vmin.f32 %v1214_v48, %v1362_v5 }
 0x386   : > { %v1224_v12 = vadd.f32 %v2099_v10, %v2836_v43  ;;  %v1218_v13 = vpop.f32.mrb[17].mxu1  ;;  %v2127_v16 = vpop.f32.mrb[6].mxu0  ;;  %v1427_v17 = vmin.f32 %v1209_v4, %v1357_v7 }
 0x387   : > { %v1219_v18 = vadd.f32 %v1218_v13, %v2836_v43  ;;  %v1372_v52 = vadd.f32 %v2127_v16, %v2838_v46  ;;  %1447 = vmin.xlane.f32.xlu1 %v1428_v11  ;;  %v1366_v53 = vpop.f32.mrb[7].mxu0 }
 0x388   : > { %v1367_v19 = vadd.f32 %v1366_v53, %v2838_v46  ;;  %1445 = vmin.xlane.f32.xlu0 %v1427_v17  ;;  %v849_v53 = vld [vmem:[%s3174_s4 + $0x8] sm:$0x3] }
 0x389   : > { %v2102_v54 = vpop.f32.mrb[18].mxu1  ;;  %v1430_v8 = vmin.f32 %v1224_v12, %v1372_v52 }
 0x38a   : > { %v1234_v9 = vadd.f32 %v2102_v54, %v2836_v43  ;;  %v1228_v14 = vpop.f32.mrb[19].mxu1  ;;  %v2130_v15 = vpop.f32.mrb[8].mxu0  ;;  %v1429_v20 = vmin.f32 %v1219_v18, %v1367_v19  ;;  %v2427_v19 = vmov 1   ;;  %v2428_v54 = vmov 2  }
 0x38b   : > { %v1229_v21 = vadd.f32 %v1228_v14, %v2836_v43  ;;  %v1382_v22 = vadd.f32 %v2130_v15, %v2838_v46  ;;  %1451 = vmin.xlane.f32.xlu1 %v1430_v8  ;;  %v1376_v23 = vpop.f32.mrb[9].mxu0 }
 0x38c   : > { %v1377_v25 = vadd.f32 %v1376_v23, %v2838_v46  ;;  %1449 = vmin.xlane.f32.xlu0 %v1429_v20 }
 0x38d   : > { %v2105_v26 = vpop.f32.mrb[20].mxu1  ;;  %v1432_v27 = vmin.f32 %v1234_v9, %v1382_v22 }
 0x38e   : > { %v1244_v28 = vadd.f32 %v2105_v26, %v2836_v43  ;;  %v1238_v29 = vpop.f32.mrb[21].mxu1  ;;  %v2133_v30 = vpop.f32.mrb[10].mxu0  ;;  %v1431_v31 = vmin.f32 %v1229_v21, %v1377_v25 }
 0x38f   : > { %v1239_v32 = vadd.f32 %v1238_v29, %v2836_v43  ;;  %v1392_v33 = vadd.f32 %v2133_v30, %v2838_v46  ;;  %1455 = vmin.xlane.f32.xlu1 %v1432_v27  ;;  %v1386_v34 = vpop.f32.mrb[11].mxu0  ;;  %v1017_v29 = vpop.xlane.xlu1 %1016 }
 0x390   : > { %v1387_v35 = vadd.f32 %v1386_v34, %v2838_v46  ;;  %1453 = vmin.xlane.f32.xlu0 %v1431_v31  ;;  %v1014_v30 = vpop.xlane.xlu0 %1013 }
 0x391   : > { %v2108_v36 = vpop.f32.mrb[22].mxu1  ;;  %v1434_v37 = vmin.f32 %v1244_v28, %v1392_v33 }
 0x392   : > { %v1254_v38 = vadd.f32 %v2108_v36, %v2836_v43  ;;  %v1248_v39 = vpop.f32.mrb[23].mxu1  ;;  %v2136_v40 = vpop.f32.mrb[12].mxu0  ;;  %v1433_v42 = vmin.f32 %v1239_v32, %v1387_v35 }
 0x393   : > { %v1249_v56 = vadd.f32 %v1248_v39, %v2836_v43  ;;  %v1402_v58 = vadd.f32 %v2136_v40, %v2838_v46  ;;  %1459 = vmin.xlane.f32.xlu1 %v1434_v37  ;;  %v1396_v60 = vpop.f32.mrb[13].mxu0  ;;  %v1023_v31 = vpop.xlane.xlu1 %1022  ;;  %v2895_v39 = vld [vmem:[%s2529_s13 + $0x8] sm:$0x3f]  ;;  %v895_v40 = vand.u32 2147483647, %v2532_v24 }
 0x394   : > { %v1397_v61 = vadd.f32 %v1396_v60, %v2838_v46  ;;  %1457 = vmin.xlane.f32.xlu0 %v1433_v42  ;;  %v1020_v32 = vpop.xlane.xlu0 %1019 }
 0x395   : > { %v2111_v62 = vpop.f32.mrb[24].mxu1  ;;  %v1436_v0 = vmin.f32 %v1254_v38, %v1402_v58  ;;  %v897_v60 = vsub.f32 0.0, %v895_v40 }
 0x396   : > { %v1264_v1 = vadd.f32 %v2111_v62, %v2836_v43  ;;  %v1258_v45 = vpop.f32.mrb[25].mxu1  ;;  %v2139_v49 = vpop.f32.mrb[14].mxu0  ;;  %v1435_v50 = vmin.f32 %v1249_v56, %v1397_v61  ;;  %v896_v56 = vand.u32 2147483647, %v2895_v39 }
 0x397   : > { %v1259_v48 = vadd.f32 %v1258_v45, %v2836_v43  ;;  %v1412_v51 = vadd.f32 %v2139_v49, %v2838_v46  ;;  %1463 = vmin.xlane.f32.xlu1 %v1436_v0  ;;  %v1406_v2 = vpop.f32.mrb[15].mxu0  ;;  %v1029_v33 = vpop.xlane.xlu1 %1028  ;;  %v899_v62 = vmul.f32 1.442695, %v897_v60 }
 0x398   : > { %v1407_v3 = vadd.f32 %v1406_v2, %v2838_v46  ;;  %1461 = vmin.xlane.f32.xlu0 %v1435_v50  ;;  %v1026_v34 = vpop.xlane.xlu0 %1025  ;;  %v898_v61 = vsub.f32 0.0, %v896_v56 }
 0x399   : > { %v2114_v4 = vpop.f32.mrb[26].mxu1  ;;  %v1438_v5 = vmin.f32 %v1264_v1, %v1412_v51 }
 0x39a   : > { %v1274_v6 = vadd.f32 %v2114_v4, %v2836_v43  ;;  %v1268_v7 = vpop.f32.mrb[27].mxu1  ;;  %v2142_v10 = vpop.f32.mrb[16].mxu0  ;;  %v1437_v11 = vmin.f32 %v1259_v48, %v1407_v3  ;;  %v901_v45 = vmul.f32 1.442695, %v898_v61 }
 0x39b   : > { %v1269_v12 = vadd.f32 %v1268_v7, %v2836_v43  ;;  %v1422_v13 = vadd.f32 %v2142_v10, %v2838_v46  ;;  %1467 = vmin.xlane.f32.xlu1 %v1438_v5  ;;  %v1416_v16 = vpop.f32.mrb[17].mxu0  ;;  %v848_v43 = vld [vmem:[%s3174_s4] sm:$0xff]  ;;  %v1035_v35 = vpop.xlane.xlu1 %1034 }
 0x39c   : > { %v1417_v17 = vadd.f32 %v1416_v16, %v2838_v46  ;;  %1465 = vmin.xlane.f32.xlu0 %v1437_v11  ;;  %v675_v46 = vsub.f32 1.0, %v2532_v24  ;;  %v1032_v36 = vpop.xlane.xlu0 %1031  ;;  %v852_v16 = vsub.s32 0, %v2554_v44 }
 0x39d   : > { %v1440_v18 = vmin.f32 %v1274_v6, %v1422_v13 }
 0x39e   : > { %v1439_v52 = vmin.f32 %v1269_v12, %v1417_v17  ;;  %2306 = vlog2.f32 %v675_v46 }
 0x39f   : > { %1471 = vmin.xlane.f32.xlu1 %v1440_v18  ;;  %2308 = vlog2.f32 %v2532_v24  ;;  %v2890_v37 = vpop.xlane.xlu1 %1040 }
 0x3a0   : > { %1469 = vmin.xlane.f32.xlu0 %v1439_v52  ;;  %v2892_v38 = vpop.xlane.xlu0 %1037  ;;  %2310 = vpow2.f32 %v899_v62 }
 0x3a1   : > { %2312 = vpow2.f32 %v901_v45 }
 0x3a3   : > { %v2898_v42 = vpop.xlane.xlu1 %1046 }
 0x3a4   : > { %v2901_v58 = vpop.xlane.xlu0 %1043 }
 0x3a7   : > { %v2903_v0 = vpop.xlane.xlu1 %1052 }
 0x3a8   : > { %v2307_v8 = vpop.eup %2306  ;;  %v2905_v1 = vpop.xlane.xlu0 %1049 }
 0x3a9   : > { %v2309_v9 = vpop.eup %2308  ;;  %v677_v14 = vmul.f32 0.6931472, %v2307_v8 }
 0x3aa   : > { %v673_v15 = vmul.f32 0.6931472, %v2309_v9  ;;  %v2311_v48 = vpop.eup %2310 }
 0x3ab   : > { %v678_v20 = vmax.f32 %v677_v14, -100.0  ;;  %v2907_v49 = vpop.xlane.xlu1 %1058  ;;  %v2313_v5 = vpop.eup %2312  ;;  %v903_v10 = vadd.f32 1.0, %v2311_v48 }
 0x3ac   : > { %v674_v21 = vmax.f32 %v673_v15, -100.0  ;;  %v2909_v50 = vpop.xlane.xlu0 %1055  ;;  %v904_v18 = vadd.f32 1.0, %v2313_v5 }
 0x3ad   : > { %v681_v22 = vmul.f32 %v2634_v59, %v678_v20 }
 0x3ae   : > { %v679_v23 = vmul.f32 %v2631_v57, %v674_v21 }
 0x3b0   : > { %861 = vperm.xlu1 %2303, %v849_v53   ;;  %v2882_v25 = vadd.f32 %v681_v22, %v679_v23 }
 0x3b2   : > { %v683_v26 = vsub.f32 0.0, %v2882_v25 }
 0x3b4   : > { %2304 = vset.pattern.permute.xlu1 %v2427_v19  ;;  %v820_v27 = vmul.f32 %v2631_v57, %v683_v26 }
 0x3b5   : > { %867 = vperm.xlu1 %2304, %v848_v43  }
 0x3b6   : > { %856 = vperm.xlu0 %2302, %v848_v43   ;;  %v822_v28 = vsel %vm821_vm14, %v820_v27, 0.0 }
 0x3b9   : > { %871 = vperm.xlu1 %2304, %v849_v53  }
 0x3ba   : > { %2305 = vset.pattern.permute.xlu0 %v2428_v54  ;;  %v2925_v54 = vrot.slane %v2752_v55, %v852_v16 }
 0x3bb   : > { %916 = vperm.xlu0 %2305, %v849_v53  }
 0x3bf   : > { %912 = vperm.xlu0 %2305, %v848_v43  }
 0x3dd   : > { %669 = vadd.xlane.f32.xlu1 %v2631_v57 }
 0x3e1   : > { %823 = vadd.xlane.f32.xlu1 %v822_v28 }
 0x410   : > { %v1444_v24 = vpop.xlane.xlu1 %1443 }
 0x411   : > { %v1474_v51 = vadd.f32 %v1444_v24, %v1017_v29  ;;  %v1442_v2 = vpop.xlane.xlu0 %1441 }
 0x412   : > { %v1473_v3 = vadd.f32 %v1442_v2, %v1014_v30 }
 0x413   : > { %v2911_v4 = vmax.f32 %v1474_v51, 0.0 }
 0x414   : > { %v2913_v6 = vmax.f32 %v1473_v3, 0.0  ;;  %v1448_v7 = vpop.xlane.xlu1 %1447 }
 0x415   : > { %2314 = vrsqrt.f32 %v2911_v4  ;;  %v1476_v11 = vadd.f32 %v1448_v7, %v1023_v31  ;;  %v1446_v12 = vpop.xlane.xlu0 %1445  ;;  %vm1514_vm11 = vcmp.eq.f32.partialorder %v2911_v4, inf  ;;  %vm1516_vm12 = vcmp.eq.f32.partialorder %v2911_v4, 0.0 }
 0x416   : > { %2316 = vrsqrt.f32 %v2913_v6  ;;  %v1475_v13 = vadd.f32 %v1446_v12, %v1020_v32  ;;  %vm1507_vm10 = vcmp.eq.f32.partialorder %v2913_v6, inf  ;;  %vm1509_vm13 = vcmp.eq.f32.partialorder %v2913_v6, 0.0 }
 0x417   : > { %v2918_v17 = vmax.f32 %v1476_v11, 0.0  ;;  %2318 = vlog2.f32 %v903_v10  ;;  %v1510_v55 = vand.u32 2147483648, %v2913_v6  ;;  %v1517_v21 = vand.u32 2147483648, %v2911_v4 }
 0x418   : > { %v2920_v52 = vmax.f32 %v1475_v13, 0.0  ;;  %v1452_v53 = vpop.xlane.xlu1 %1451 }
 0x419   : > { %2320 = vrsqrt.f32 %v2918_v17  ;;  %v1478_v43 = vadd.f32 %v1452_v53, %v1029_v33  ;;  %v1450_v19 = vpop.xlane.xlu0 %1449  ;;  %vm1528_vm1 = vcmp.eq.f32.partialorder %v2918_v17, inf  ;;  %vm1530_vm4 = vcmp.eq.f32.partialorder %v2918_v17, 0.0 }
 0x41a   : > { %2322 = vrsqrt.f32 %v2920_v52  ;;  %v1477_v46 = vadd.f32 %v1450_v19, %v1026_v34  ;;  %vm1521_vm0 = vcmp.eq.f32.partialorder %v2920_v52, inf  ;;  %vm1523_vm3 = vcmp.eq.f32.partialorder %v2920_v52, 0.0 }
 0x41b   : > { %v2927_v8 = vmax.f32 %v1478_v43, 0.0  ;;  %2324 = vlog2.f32 %v904_v18  ;;  %v1524_v31 = vand.u32 2147483648, %v2920_v52  ;;  %v1531_v32 = vand.u32 2147483648, %v2918_v17 }
 0x41c   : > { %v2929_v44 = vmax.f32 %v1477_v46, 0.0  ;;  %v1456_v9 = vpop.xlane.xlu1 %1455 }
 0x41d   : > { %2326 = vrsqrt.f32 %v2927_v8  ;;  %v1480_v14 = vadd.f32 %v1456_v9, %v1035_v35  ;;  %v1454_v15 = vpop.xlane.xlu0 %1453  ;;  %vm1542_vm5 = vcmp.eq.f32.partialorder %v2927_v8, inf  ;;  %vm1544_vm15 = vcmp.eq.f32.partialorder %v2927_v8, 0.0 }
 0x41e   : > { %2328 = vrsqrt.f32 %v2929_v44  ;;  %v1479_v20 = vadd.f32 %v1454_v15, %v1032_v36  ;;  %vm1535_vm6 = vcmp.eq.f32.partialorder %v2929_v44, inf  ;;  %vm1537_vm7 = vcmp.eq.f32.partialorder %v2929_v44, 0.0 }
 0x41f   : > { %v2315_v22 = vpop.eup %2314  ;;  %v2940_v23 = vmax.f32 %v1480_v14, 0.0  ;;  %v1538_v2 = vand.u32 2147483648, %v2929_v44  ;;  %v1545_v12 = vand.u32 2147483648, %v2927_v8 }
 0x420   : > { %v2317_v27 = vpop.eup %2316  ;;  %v2945_v28 = vmax.f32 %v1479_v20, 0.0  ;;  %v1460_v29 = vpop.xlane.xlu1 %1459  ;;  %v1513_v30 = vmul.f32 %v2315_v22, %v2911_v4 }
 0x421   : > { %2330 = vrsqrt.f32 %v2940_v23  ;;  %v1482_v33 = vadd.f32 %v1460_v29, %v2890_v37  ;;  %v1458_v34 = vpop.xlane.xlu0 %1457  ;;  %v1506_v35 = vmul.f32 %v2317_v27, %v2913_v6  ;;  %v2954_v36 = vpop.eup %2318  ;;  %vm1556_vm8 = vcmp.eq.f32.partialorder %v2940_v23, inf }
 0x422   : > { %2332 = vrsqrt.f32 %v2945_v28  ;;  %v1481_v40 = vadd.f32 %v1458_v34, %v2892_v38  ;;  %v1515_v56 = vsel %vm1514_vm11, %v2911_v4, %v1513_v30  ;;  %vm1549_vm9 = vcmp.eq.f32.partialorder %v2945_v28, inf }
 0x423   : > { %v2321_v37 = vpop.eup %2320  ;;  %v2963_v60 = vmax.f32 %v1482_v33, 0.0  ;;  %v1508_v61 = vsel %vm1507_vm10, %v2913_v6, %v1506_v35  ;;  %v1518_v62 = vsel %vm1516_vm12, %v1517_v21, %v1515_v56  ;;  %vm1551_vm10 = vcmp.eq.f32.partialorder %v2945_v28, 0.0 }
 0x424   : > { %v2323_v38 = vpop.eup %2322  ;;  %v2971_v45 = vmax.f32 %v1481_v40, 0.0  ;;  %v1464_v24 = vpop.xlane.xlu1 %1463  ;;  %v1511_v48 = vsel %vm1509_vm13, %v1510_v55, %v1508_v61  ;;  %v1527_v51 = vmul.f32 %v2321_v37, %v2918_v17  ;;  %v1552_v27 = vand.u32 2147483648, %v2945_v28 }
 0x425   : > { %v2977_v3 = vpop.eup %2324  ;;  %2334 = vrsqrt.f32 %v2963_v60  ;;  %v1484_v4 = vadd.f32 %v1464_v24, %v2898_v42  ;;  %v1462_v5 = vpop.xlane.xlu0 %1461  ;;  %v2231_v7 = vpack.c.bf16 %v1518_v62, %v1511_v48  ;;  %v1520_v10 = vmul.f32 %v2323_v38, %v2920_v52 }
 0x426   : > { %2336 = vrsqrt.f32 %v2971_v45  ;;  %v1483_v11 = vadd.f32 %v1462_v5, %v2901_v58  ;;  %v1529_v6 = vsel %vm1528_vm1, %v2918_v17, %v1527_v51  ;;  %v1559_v33 = vand.u32 2147483648, %v2940_v23 }
 0x427   : > { %v2327_v13 = vpop.eup %2326  ;;  %v2988_v16 = vmax.f32 %v1484_v4, 0.0  ;;  %2232 = vmatpush3.bf16.msra.mxu1 %v2231_v7  ;;  %v1522_v42 = vsel %vm1521_vm0, %v2920_v52, %v1520_v10  ;;  %v1532_v18 = vsel %vm1530_vm4, %v1531_v32, %v1529_v6  ;;  %vm1558_vm11 = vcmp.eq.f32.partialorder %v2940_v23, 0.0 }
 0x428   : > { %v2329_v58 = vpop.eup %2328  ;;  %v2996_v53 = vmax.f32 %v1483_v11, 0.0  ;;  %v1468_v43 = vpop.xlane.xlu1 %1467  ;;  %2233 = vmatprep.subr.bf16.mxu1 %v2421_v47  ;;  %v1525_v19 = vsel %vm1523_vm3, %v1524_v31, %v1522_v42  ;;  %v1541_v46 = vmul.f32 %v2327_v13, %v2927_v8  ;;  %vm1563_vm12 = vcmp.eq.f32.partialorder %v2971_v45, inf }
 0x429   : > { %2338 = vrsqrt.f32 %v2988_v16  ;;  %v1486_v17 = vadd.f32 %v1468_v43, %v2903_v0  ;;  %v1466_v9 = vpop.xlane.xlu0 %1465  ;;  %v2234_v14 = vpack.c.bf16 %v1532_v18, %v1525_v19  ;;  %v1534_v15 = vmul.f32 %v2329_v58, %v2929_v44 }
 0x42a   : > { %2340 = vrsqrt.f32 %v2996_v53  ;;  %v1485_v55 = vadd.f32 %v1466_v9, %v2905_v1  ;;  %v1543_v52 = vsel %vm1542_vm5, %v2927_v8, %v1541_v46  ;;  %vm1570_vm13 = vcmp.eq.f32.partialorder %v2963_v60, inf }
 0x42b   : > { %v2331_v20 = vpop.eup %2330  ;;  %v3012_v21 = vmax.f32 %v1486_v17, 0.0  ;;  %2235 = vmatpush3.bf16.msra.mxu1 %v2234_v14  ;;  %v1536_v0 = vsel %vm1535_vm6, %v2929_v44, %v1534_v15  ;;  %v1546_v22 = vsel %vm1544_vm15, %v1545_v12, %v1543_v52  ;;  %v1573_v4 = vand.u32 2147483648, %v2963_v60 }
 0x42c   : > { %v2333_v1 = vpop.eup %2332  ;;  %v3020_v29 = vmax.f32 %v1485_v55, 0.0  ;;  %v1472_v30 = vpop.xlane.xlu1 %1471  ;;  %2236 = vmatprep.subr.bf16.mxu1 %v2421_v47  ;;  %v1539_v31 = vsel %vm1537_vm7, %v1538_v2, %v1536_v0  ;;  %v1555_v32 = vmul.f32 %v2331_v20, %v2940_v23  ;;  %v1566_v5 = vand.u32 2147483648, %v2971_v45 }
 0x42d   : > { %2342 = vrsqrt.f32 %v3012_v21  ;;  %v1488_v8 = vadd.f32 %v1472_v30, %v2907_v49  ;;  %v1470_v34 = vpop.xlane.xlu0 %1469  ;;  %v2237_v35 = vpack.c.bf16 %v1546_v22, %v1539_v31  ;;  %v1548_v40 = vmul.f32 %v2333_v1, %v2945_v28 }
 0x42e   : > { %2344 = vrsqrt.f32 %v3020_v29  ;;  %v1487_v56 = vadd.f32 %v1470_v34, %v2909_v50  ;;  %v1557_v44 = vsel %vm1556_vm8, %v2940_v23, %v1555_v32  ;;  %vm1572_vm1 = vcmp.eq.f32.partialorder %v2963_v60, 0.0 }
 0x42f   : > { %v2335_v37 = vpop.eup %2334  ;;  %v3036_v61 = vmax.f32 %v1488_v8, 0.0  ;;  %2238 = vmatpush3.bf16.msra.mxu1 %v2237_v35  ;;  %v1550_v49 = vsel %vm1549_vm9, %v2945_v28, %v1548_v40  ;;  %v1560_v62 = vsel %vm1558_vm11, %v1559_v33, %v1557_v44  ;;  %vm1565_vm0 = vcmp.eq.f32.partialorder %v2971_v45, 0.0 }
 0x430   : > { %v2337_v38 = vpop.eup %2336  ;;  %v3042_v24 = vmax.f32 %v1487_v56, 0.0  ;;  %v862_v50 = vpop.permute.xlu1 %861  ;;  %2239 = vmatprep.subr.bf16.mxu1 %v2421_v47  ;;  %v1553_v23 = vsel %vm1551_vm10, %v1552_v27, %v1550_v49  ;;  %v1569_v48 = vmul.f32 %v2335_v37, %v2963_v60  ;;  %vm1577_vm3 = vcmp.eq.f32.partialorder %v2996_v53, inf }
 0x431   : > { %2346 = vrsqrt.f32 %v3036_v61  ;;  %v2240_v51 = vpack.c.bf16 %v1560_v62, %v1553_v23  ;;  %v1562_v2 = vmul.f32 %v2337_v38, %v2971_v45  ;;  %vm865_vm4 = vcmp.ge.f32.partialorder %v2925_v54, %v862_v50  ;;  %v2356_v50 = vld [vmem:[%s2529_s13] sm:$0xff]  ;;  %s261_s13 = scalar_lea.vmem [#allocation2], %s260_s11 }
 0x432   : > { %2348 = vrsqrt.f32 %v3042_v24  ;;  %v1571_v7 = vsel %vm1570_vm13, %v2963_v60, %v1569_v48  ;;  %vm1584_vm5 = vcmp.eq.f32.partialorder %v2988_v16, inf  ;;  %v1587_v58 = vand.u32 2147483648, %v2988_v16  ;;  %s1716_s14 = sshll.u32 %s261_s13, 4  ;;  %s3130_s14 = int_to_ptr.vmem [resolvable:$true] %s1716_s14 }
 0x433   : > { %v2339_v28 = vpop.eup %2338  ;;  %2241 = vmatpush3.bf16.msra.mxu1 %v2240_v51  ;;  %v1564_v10 = vsel %vm1563_vm12, %v2971_v45, %v1562_v2  ;;  %v1574_v11 = vsel %vm1572_vm1, %v1573_v4, %v1571_v7  ;;  %v1580_v43 = vand.u32 2147483648, %v2996_v53  ;;  %vm1586_vm7 = vcmp.eq.f32.partialorder %v2988_v16, 0.0  ;;  %s2357_s23 = scalar_lea.vmem %s3130_s14, 16  ;;  %p2364_p0 = scmp.lt.s32.totalorder %s3130_s14, %s2362_s26 }
 0x434   : > { %v2341_v6 = vpop.eup %2340  ;;  %v868_v12 = vpop.permute.xlu1 %867  ;;  %2242 = vmatprep.subr.bf16.mxu1 %v2421_v47  ;;  %v1567_v13 = vsel %vm1565_vm0, %v1566_v5, %v1564_v10  ;;  %v1583_v60 = vmul.f32 %v2339_v28, %v2988_v16  ;;  %vm1579_vm9 = vcmp.eq.f32.partialorder %v2996_v53, 0.0  ;;  %vm1591_vm10 = vcmp.eq.f32.partialorder %v3020_v29, inf  ;;  %p2358_p11 = scmp.ne.s32.totalorder %s3130_s14, %s2357_s23  ;;  %p2365_p1 = scmp.lt.s32.totalorder %s2363_s6, %s2357_s23 }
 0x435   : > { %vm874_vm6 = vcmp.lt.f32.partialorder %v2925_v54, %v868_v12  ;;  %v857_v42 = vpop.permute.xlu0 %856  ;;  %v2243_v18 = vpack.c.bf16 %v1574_v11, %v1567_v13  ;;  %v1576_v45 = vmul.f32 %v2341_v6, %v2996_v53  ;;  %vm1598_vm11 = vcmp.eq.f32.partialorder %v3012_v21, inf }
 0x436   : > { %vm864_vm15 = vcmp.ge.f32.partialorder %v2925_v54, %v857_v42  ;;  %v1585_v19 = vsel %vm1584_vm5, %v2988_v16, %v1583_v60  ;;  %v1601_v16 = vand.u32 2147483648, %v3012_v21  ;;  %vm1593_vm1 = vcmp.eq.f32.partialorder %v3020_v29, 0.0  ;;  %p2359_p12 = pnand %p2358_p11, %p2499_p5  ;;  %p2366_p2 = por %p2365_p1, %p2364_p0 }
 0x437   : > { %v2343_v46 = vpop.eup %2342  ;;  %vm876_vm8 = vmand %vm864_vm15, %vm874_vm6  ;;  %2244 = vmatpush3.bf16.msra.mxu1 %v2243_v18  ;;  %v1578_v17 = vsel %vm1577_vm3, %v2996_v53, %v1576_v45  ;;  %v1588_v9 = vsel %vm1586_vm7, %v1587_v58, %v1585_v19  ;;  %v1594_v22 = vand.u32 2147483648, %v3020_v29  ;;  %vm1600_vm0 = vcmp.eq.f32.partialorder %v3012_v21, 0.0 }
 0x438   : > { %v2345_v14 = vpop.eup %2344  ;;  %v872_v15 = vpop.permute.xlu1 %871  ;;  %2245 = vmatprep.subr.bf16.mxu1 %v2421_v47  ;;  %v1581_v55 = vsel %vm1579_vm9, %v1580_v43, %v1578_v17  ;;  %v1597_v52 = vmul.f32 %v2343_v46, %v3012_v21  ;;  %v1882_v20 = vsel %vm876_vm8, 1.0, %v2424_v63  ;;  %vm1605_vm3 = vcmp.eq.f32.partialorder %v3042_v24, inf  ;;  %p2360_p13 = pneg %p2359_p12 }
 0x439   : > { %vm875_vm12 = vcmp.lt.f32.partialorder %v2925_v54, %v872_v15  ;;  %v2246_v0 = vpack.c.bf16 %v1588_v9, %v1581_v55  ;;  %v1590_v53 = vmul.f32 %v2345_v14, %v3020_v29  ;;  %v886_v33 = vrot.slane %v1882_v20, 4 }
 0x43a   : > { %vm877_vm13 = vmand %vm865_vm4, %vm875_vm12  ;;  %v1599_v27 = vsel %vm1598_vm11, %v3012_v21, %v1597_v52  ;;  %vm1612_vm4 = vcmp.eq.f32.partialorder %v3036_v61, inf  ;;  %v1615_v56 = vand.u32 2147483648, %v3036_v61  ;;  %v1608_v44 = vand.u32 2147483648, %v3042_v24  ;;  %v917_v11 = vpop.permute.xlu0 %916  ;;  %p2367_p3 = pnand %p2366_p2, %p2360_p13 }
 0x43b   : > { %v2347_v1 = vpop.eup %2346  ;;  %v1883_v30 = vsel %vm877_vm13, 1.0, %v2424_v63  ;;  %2247 = vmatpush3.bf16.msra.mxu1 %v2246_v0  ;;  %v1592_v31 = vsel %vm1591_vm10, %v3020_v29, %v1590_v53  ;;  %v1602_v32 = vsel %vm1600_vm0, %v1601_v16, %v1599_v27  ;;  %vm1614_vm5 = vcmp.eq.f32.partialorder %v3036_v61, 0.0 }
 0x43c   : > { %v2349_v54 = vpop.eup %2348  ;;  %v887_v8 = vrot.slane %v1883_v30, 4  ;;  %2248 = vmatprep.subr.bf16.mxu1 %v2421_v47  ;;  %v1595_v34 = vsel %vm1593_vm1, %v1594_v22, %v1592_v31  ;;  %v1611_v21 = vmul.f32 %v2347_v1, %v3036_v61  ;;  %vm1607_vm6 = vcmp.eq.f32.partialorder %v3042_v24, 0.0 }
 0x43d   : > { %v2249_v35 = vpack.c.bf16 %v1602_v32, %v1595_v34  ;;  %v1604_v40 = vmul.f32 %v2349_v54, %v3042_v24  ;;  %v1617_v23 = vmul.f32 %v2356_v50, %v2631_v57  ;;  %v883_v51 = vmax.f32 %v2895_v39, 0.0 }
 0x43e   : > { %v888_v29 = vsel %vm361_vm2, %v886_v33, %v887_v8  ;;  %v1613_v37 = vsel %vm1612_vm4, %v3036_v61, %v1611_v21  ;;  %v882_v61 = vmax.f32 %v2356_v50, 0.0  ;;  %v891_v4 = vmul.f32 %v2356_v50, %v886_v33 }
 0x43f   : > { %2250 = vmatpush3.bf16.msra.mxu1 %v2249_v35  ;;  %v1606_v49 = vsel %vm1605_vm3, %v3042_v24, %v1604_v40  ;;  %v1616_v62 = vsel %vm1614_vm5, %v1615_v56, %v1613_v37  ;;  %v892_v2 = vmul.f32 %v888_v29, %v2895_v39  ;;  %v1619_v5 = vrot.slane %v1617_v23, 3  ;;  %v913_v39 = vpop.permute.xlu0 %912 }
 0x440   : > { %2251 = vmatprep.subr.bf16.mxu1 %v2421_v47  ;;  %v1609_v38 = vsel %vm1607_vm6, %v1608_v44, %v1606_v49  ;;  %v908_v28 = vmul.f32 0.6931472, %v2977_v3  ;;  %v893_v24 = vsub.f32 %v882_v61, %v891_v4  ;;  %v906_v47 = vmul.f32 0.6931472, %v2954_v36 }
 0x441   : > { %v2252_v48 = vpack.c.bf16 %v1616_v62, %v1609_v38  ;;  %v894_v7 = vsub.f32 %v883_v51, %v892_v2  ;;  %vm928_vm15 = vcmask 1041408   ;;  %vm816_vm8 = vcmask 1040384  }
 0x442   : > { %v909_v6 = vadd.f32 %v906_v47, %v893_v24  ;;  %vm1699_vm9 = vcmask 15360   ;;  %vm1701_vm10 = vcmask 19459  }
 0x443   : > { %2253 = vmatpush3.bf16.msra.mxu1 %v2252_v48  ;;  %v910_v10 = vadd.f32 %v908_v28, %v894_v7 }
 0x444   : > { %v921_v13 = vrot.slane %v909_v6, 4 }
 0x445   : > { %v922_v12 = vrot.slane %v910_v10, 4 }
 0x446   : > { %2176 = vmatmul.mubr.f32.vlgmr.msra.gmra.mrb[28].mxu1 %v1619_v5 }
 0x447   : > { %v927_v60 = vmul.f32 %v922_v12, %v917_v11  ;;  %v923_v42 = vsel %vm361_vm2, %v921_v13, %v922_v12 }
 0x448   : > { %v926_v18 = vmul.f32 %v923_v42, %v913_v39 }
 0x449   : > { %v929_v45 = vsel %vm928_vm15, %v927_v60, 0.0 }
 0x44a   : > { %v930_v58 = vadd.f32 %v929_v45, %v926_v18 }
 0x44c   : > { %v931_v43 = vrot.slane %v930_v58, 4 }
 0x44e   : > { %v932_v19 = vadd.f32 %v931_v43, %v930_v58 }
 0x450   : > { %v933_v3 = vrot.slane %v932_v19, 2 }
 0x452   : > { %v934_v46 = vadd.f32 %v933_v3, %v932_v19 }
 0x454   : > { %v935_v36 = vrot.slane %v934_v46, 1 }
 0x456   : > { %v936_v55 = vadd.f32 %v935_v36, %v934_v46 }
 0x458   : > { %v938_v0 = vmul.f32 0.1, %v936_v55 }
 0x45a   : > { %v939_v22 = vmul.f32 %v2631_v57, %v938_v0 }
 0x46a   : > { %v670_v17 = vpop.xlane.xlu1 %669 }
 0x46b   : > { %v671_v9 = vmax.f32 %v670_v17, 1.0  ;;  %vm832_vm2 = vcmp.gt.f32.partialorder %v670_v17, 0.0 }
 0x46d   : > { %vm812_vm7 = vcmp.le.f32.partialorder %v2747_v41, %v671_v9  ;;  %2350 = vrcp.f32 %v671_v9 }
 0x46e   : > { %v1881_v14 = vsel %vm812_vm7, 1.0, %v2424_v63  ;;  %v824_v57 = vpop.xlane.xlu1 %823 }
 0x46f   : > { %v815_v15 = vmul.f32 %v1881_v14, %v2634_v59 }
 0x471   : > { %v817_v52 = vsel %vm816_vm8, %v815_v15, 0.0  ;;  %v826_v16 = vrot.slane %v815_v15, 5 }
 0x472   : > { %818 = vadd.xlane.f32.xlu0 %v817_v52 }
 0x473   : > { %v828_v20 = vmul.f32 %v826_v16, %v683_v26 }
 0x475   : > { %v829_v53 = vsel %vm821_vm14, %v828_v20, 0.0  ;;  %vm1697_vm14 = vcmask 7168  }
 0x476   : > { %830 = vadd.xlane.f32.xlu1 %v829_v53 }
 0x477   : > { %v2351_v41 = vpop.eup %2350 }
 0x47a   : > { %940 = vadd.xlane.f32.xlu1 %v939_v22 }
 0x4ff   : > { %v819_v30 = vpop.xlane.xlu0 %818 }
 0x500   : > { %v834_v31 = vadd.f32 %v819_v30, %v670_v17  ;;  %v841_v26 = vmax.f32 %v819_v30, 1.0 }
 0x502   : > { %v835_v25 = vmax.f32 %v834_v31, 1.0  ;;  %v843_v54 = vrot.slane %v841_v26, 5 }
 0x503   : > { %v831_v33 = vpop.xlane.xlu1 %830 }
 0x504   : > { %v837_v32 = vrot.slane %v835_v25, 5  ;;  %v833_v34 = vadd.f32 %v831_v33, %v824_v57 }
 0x506   : > { %2352 = vrcp.f32 %v837_v32 }
 0x507   : > { %2354 = vrcp.f32 %v843_v54  ;;  %v941_v56 = vpop.xlane.xlu1 %940 }
 0x508   : > { %v943_v44 = vmul.f32 %v2351_v41, %v941_v56 }
 0x510   : > { %v2353_v8 = vpop.eup %2352 }
 0x511   : > { %v2355_v21 = vpop.eup %2354  ;;  %v840_v35 = vmul.f32 %v2353_v8, %v833_v34 }
 0x512   : > { %v846_v40 = vmul.f32 %v2355_v21, %v831_v33 }
 0x514   : > { %v847_v29 = vsel %vm832_vm2, %v840_v35, %v846_v40 }
 0x515   : > { %v1698_v37 = vsel %vm1697_vm14, %v847_v29, %v943_v44 }
 0x519   : > { %v1687_v63 = vpop.f32.mrb[28].mxu1 }
 0x51a   : > { %v1691_v27 = vmul.f32 %v2351_v41, %v1687_v63  ;;  %v2177_v1 = vpop.f32.mrb[29].mxu1 }
 0x51c   : > { %v1693_v59 = vrot.slane %v1691_v27, 5 }
 0x51e   : > { %1694 = vrot.lane.b32.xlu1 %v1693_v59, %s2429_s10 }
 0x590   : > { %v1695_v49 = vpop.permute.xlu1 %1694 }
 0x591   : > { %v1700_v62 = vsel %vm1699_vm9, %v1698_v37, %v1695_v49 }
 0x592   : > { %1702 = vst.msk [vmem:[%s261_s13 - $0x3] sm:$0x8] %vm1701_vm10, %v1700_v62 }
 0x593   : > { %2370 = shalt.err (!%p2367_p3)
}
 0x594   : > { %s2371_s30 = scalar_lea.hbm %s3128_s17, 16  ;;  %s2375_s9 = scalar_lea.hbm %s3175_s5, 32 }
 0x595   : > { %p2372_p4 = scmp.ne.s32.totalorder %s3128_s17, %s2371_s30  ;;  %p2376_p9 = scmp.lt.u32.totalorder %s3128_s17, %s3175_s5 }
 0x596   : > { %p2377_p10 = scmp.lt.u32.totalorder %s2375_s9, %s2371_s30  ;;  %p2379_p12 = scmp.lt.u32.totalorder %s2371_s30, %s3128_s17 }
 0x597   : > { %p2373_p7 = pnand %p2372_p4, %p2499_p5 }
 0x598   : > { %p2378_p11 = por %p2377_p10, %p2376_p9 }
 0x599   : > { %p2374_p8 = pneg %p2373_p7 }
 0x59a   : > { %p2380_p13 = por %p2379_p12, %p2378_p11 }
 0x59c   : > { %p2381_p0 = pnand %p2380_p13, %p2374_p8 }
 0x59e   : > { %2384 = shalt.err (!%p2381_p0)
}
 0x59f   : > { %2254 = dma.vmem_to_hbm [thread:$0]  (%p2499_p5), %s3130_s14, 16, %s3128_s17, %s1704_s22  }
 0x5a0 PF: > { %p2260_p1 = scmp.ge.s32.totalorder %s2419_s21, 2  ;;  %s1728_s12 = sand.u32 1, %s2407_s18  }
 0x5a1   : > { %s1729_s13 = scalar_lea.sflag [#allocation3], %s1728_s12 }
 0x5a2   : > { %p2257_p2 = pnand %p2260_p1, %p2503_p6 }
 0x5a4   : > { %2402 = dma.done.wait (!%p2257_p2), %s1729_s13, 16  }
 0x5a5   : > { %2404 = vsyncadd (!%p2257_p2), %s1729_s13, 4294967280  ;;  %p15_p3 = scmp.ge.s32.totalorder %s2486_s24, 4   ;;  %s3180_s18 = smov %s2411_s19 }
 0x5a6   : > { %s3181_s19 = smov %s2415_s20  ;;  %s3182_s20 = smov %s2497_s27 }
 0x5a7   : > { %s3183_s21 = smov %s2486_s24  ;;  %17 = sbr.rel (!%p15_p3) target bundleno = 3 (0x3), region = 84 }
 0x5ae   :  { %1733 = vsyncpa [#allocation3], 1 }
 0x5af   :  { %1735 = vsyncpa [#allocation3 + $0x1], 1 }

</bundles_post_ra>
